<compile_context>
chip_gen: v5e
topology: v5e:2x2
jax: 0.10.0
libtpu: 0.0.40
codegen_flags: <defaults>
</compile_context>

<pallas_src>
import math
import jax
import jax.numpy as jnp
from jax.experimental import pallas as pl
from jax.experimental.pallas import tpu as pltpu


def lstm_recurrence_kernel(gx_ref, u_ref, hseq_ref, h_out_ref, c_out_ref,
                           h_sc, c_sc):
    """Sequential LSTM recurrence over one (batch-block, time-chunk) tile.

    gx_ref:    (TB, T, 4H) bf16  precomputed x @ W + bias for this chunk
    u_ref:     (H, 4H)     bf16  recurrent weights (VMEM-resident, Buffered(1))
    hseq_ref:  (TB, T, H)  f32   hidden states for this chunk
    h_out_ref, c_out_ref: (TB, H) final states, written only on the last chunk
    h_sc, c_sc: (TB, H) f32 carries, persist across the time-chunk grid axis
    """
    chunk = pl.program_id(1)

    @pl.when(chunk == 0)
    def _():
        h_sc[...] = jnp.zeros_like(h_sc)
        c_sc[...] = jnp.zeros_like(c_sc)

    H = h_sc.shape[-1]
    T = gx_ref.shape[1]
    u = u_ref[...]                      # bf16 recurrent weights, fetched once

    h = h_sc[...]                       # f32 carries
    c = c_sc[...]

    hs = []
    # TODO(synk): at production B/H, switch to lax.fori_loop(..., unroll=True)
    # with a VMEM chunk buffer to bound vreg live ranges; the static unroll is
    # fine at these sizes and lets us emit one dense hseq store per chunk.
    for tt in range(T):
        # Recurrent matmul with bf16 operands (MXU-native), f32 accumulation.
        rec = jnp.dot(h.astype(jnp.bfloat16), u,
                      preferred_element_type=jnp.float32)
        gates = gx_ref[:, tt, :].astype(jnp.float32) + rec
        # Gate columns were permuted in the wrapper to [i, f, o, g]:
        sig = jax.nn.sigmoid(gates[:, :3 * H])
        i_t = sig[:, 0 * H:1 * H]
        f_t = sig[:, 1 * H:2 * H]
        o_t = sig[:, 2 * H:3 * H]
        g_t = jnp.tanh(gates[:, 3 * H:])
        c = f_t * c + i_t * g_t
        h = o_t * jnp.tanh(c)
        hs.append(h)

    # One dense store per chunk instead of T sublane-masked vst.msk stores.
    hseq_ref[...] = jnp.stack(hs, axis=1).astype(hseq_ref.dtype)

    h_sc[...] = h
    c_sc[...] = c

    # Final-state stores only on the last chunk.
    @pl.when(chunk == pl.num_programs(1) - 1)
    def _():
        h_out_ref[...] = h.astype(h_out_ref.dtype)
        c_out_ref[...] = c.astype(c_out_ref.dtype)


def custom_lstm(x, W, U, bias, *, seq_chunk=32, batch_block=None):
    """x: (B, S, D). Returns (hidden_seq (B, S, H), (h_T (B, H), c_T (B, H)))."""
    B, S, D = x.shape
    H = U.shape[0]

    # Batch blocking: independent across batch, so it can be a parallel grid
    # axis (uses both TensorCores on v7x, harmless on v5e/v6e).
    TB = batch_block if (batch_block is not None and B % batch_block == 0) else B
    nb = B // TB

    # Timesteps per grid step: the second-to-last block dim must be a multiple
    # of 8 (sublane) or span the full sequence.
    candidates = [t for t in range(8, min(seq_chunk, S) + 1, 8) if S % t == 0]
    T = max(candidates) if candidates else S
    n_chunks = S // T

    # Permute gate columns [i, f, g, o] -> [i, f, o, g] (free, host-side) so a
    # single sigmoid covers the first 3H columns and a single tanh the last H.
    def permute(a):
        return jnp.concatenate(
            [a[..., 0:2 * H], a[..., 3 * H:4 * H], a[..., 2 * H:3 * H]], axis=-1)

    Wp, Up, bp = permute(W), permute(U), permute(bias)

    # Hoisted input projection: one large, fully parallel MXU matmul in plain
    # XLA (instead of S tiny per-step matmuls), bias folded in once. Stored as
    # bf16: halves the dominant HBM stream / double-buffered VMEM footprint.
    gates_x = (jnp.einsum("bsd,dg->bsg", x, Wp,
                          preferred_element_type=jnp.float32)
               + bp).astype(jnp.bfloat16)                         # (B, S, 4H)
    U_bf16 = Up.astype(jnp.bfloat16)                              # (H, 4H)

    # VMEM budget: double-buffered gates_x & hseq chunks, single-buffered U
    # (Buffered(1)), double-buffered final-state outputs, f32 carries.
    vmem_bytes = (
        2 * TB * T * 4 * H * 2          # gates_x chunk (bf16) x2
        + 1 * H * 4 * H * 2             # U (bf16), Buffered(1)
        + 2 * TB * T * H * 4            # hidden_seq chunk (f32) x2
        + 2 * 2 * TB * H * 4            # h_out, c_out (f32) x2 each
        + 2 * TB * H * 4                # h/c carry scratch (f32)
    )
    vmem_limit = min(100 * 1024 * 1024,
                     max(16 * 1024 * 1024, int(1.5 * vmem_bytes)))

    grid_spec = pltpu.PrefetchScalarGridSpec(
        num_scalar_prefetch=0,
        grid=(nb, n_chunks),
        in_specs=[
            # gates_x chunk for this (batch block, time chunk)
            pl.BlockSpec((TB, T, 4 * H), lambda b, c: (b, c, 0)),
            # U: constant index_map -> fetched once; single-buffered to halve
            # its VMEM reservation (matters most on v7x's 64 MiB VMEM).
            pl.BlockSpec((H, 4 * H), lambda b, c: (0, 0),
                         pipeline_mode=pl.Buffered(1)),
        ],
        out_specs=[
            pl.BlockSpec((TB, T, H), lambda b, c: (b, c, 0)),     # hidden_seq
            pl.BlockSpec((TB, H), lambda b, c: (b, 0)),           # final h
            pl.BlockSpec((TB, H), lambda b, c: (b, 0)),           # final c
        ],
        scratch_shapes=[
            pltpu.VMEM((TB, H), jnp.float32),                     # h carry
            pltpu.VMEM((TB, H), jnp.float32),                     # c carry
        ],
    )

    hidden_seq, h_T, c_T = pl.pallas_call(
        lstm_recurrence_kernel,
        out_shape=(
            jax.ShapeDtypeStruct((B, S, H), jnp.float32),
            jax.ShapeDtypeStruct((B, H), jnp.float32),
            jax.ShapeDtypeStruct((B, H), jnp.float32),
        ),
        grid_spec=grid_spec,
        compiler_params=pltpu.CompilerParams(
            # batch axis is parallel (megacore on v7x); the time recurrence is
            # sequential and MUST stay "arbitrary" (h/c scratch carry + the
            # deferred h_out/c_out writeback depend on it).
            dimension_semantics=("parallel", "arbitrary"),
            vmem_limit_bytes=vmem_limit,
        ),
    )(gates_x, U_bf16)

    return hidden_seq, (h_T, c_T)


def lstm_reference(x, W, U, bias):
    """Pure-JAX f32 reference matching the PyTorch module."""
    B, S, D = x.shape
    H = U.shape[0]
    h = jnp.zeros((B, H), jnp.float32)
    c = jnp.zeros((B, H), jnp.float32)
    outs = []
    for t in range(S):
        gates = x[:, t, :] @ W + h @ U + bias
        i = jax.nn.sigmoid(gates[:, :H])
        f = jax.nn.sigmoid(gates[:, H:2 * H])
        g = jnp.tanh(gates[:, 2 * H:3 * H])
        o = jax.nn.sigmoid(gates[:, 3 * H:])
        c = f * c + i * g
        h = o * jnp.tanh(c)
        outs.append(h)
    return jnp.stack(outs, axis=1), (h, c)


if __name__ == "__main__":
    B, D, H = 2, 4, 32
    key = jax.random.PRNGKey(0)
    kx, kw, ku, kb = jax.random.split(key, 4)

    stdv = 1.0 / math.sqrt(H)
    W = jax.random.uniform(kw, (D, 4 * H), jnp.float32, minval=-stdv, maxval=stdv)
    U = jax.random.uniform(ku, (H, 4 * H), jnp.float32, minval=-stdv, maxval=stdv)
    bias = jax.random.uniform(kb, (4 * H,), jnp.float32, minval=-stdv, maxval=stdv)

    # S=8 -> single chunk; S=16 -> two chunks (exercises the h/c carry across
    # grid steps). Note: production callers should use B % 8 == 0 and
    # H % 128 == 0 for aligned vregs / free gate slices.
    for S in (8, 16):
        x = jax.random.normal(jax.random.fold_in(kx, S), (B, S, D),
                              dtype=jnp.float32)

        hidden_seq, (h_T, c_T) = jax.block_until_ready(
            custom_lstm(x, W, U, bias, seq_chunk=8))

        ref_seq, (ref_h, ref_c) = lstm_reference(x, W, U, bias)
        # bf16 gates_x / U / recurrent-dot operands -> relaxed tolerances.
        assert jnp.allclose(hidden_seq, ref_seq, atol=2e-2, rtol=2e-2)
        assert jnp.allclose(h_T, ref_h, atol=2e-2, rtol=2e-2)
        assert jnp.allclose(c_T, ref_c, atol=2e-2, rtol=2e-2)

    print("KERNEL_OK")
</pallas_src>

<mosaic_0001>
module attributes {stable_mosaic.version = 11 : i64} {
  func.func @lstm_recurrence_kernel(%arg0: i32, %arg1: i32, %arg2: memref<2x8x128xbf16, #tpu.memory_space<vmem>>, %arg3: memref<32x128xbf16, #tpu.memory_space<vmem>>, %arg4: memref<2x8x32xf32, #tpu.memory_space<vmem>>, %arg5: memref<2x32xf32, #tpu.memory_space<vmem>>, %arg6: memref<2x32xf32, #tpu.memory_space<vmem>>, %arg7: memref<2x32xf32, #tpu.memory_space<vmem>>, %arg8: memref<2x32xf32, #tpu.memory_space<vmem>>) attributes {dimension_semantics = [#tpu.dimension_semantics<parallel>, #tpu.dimension_semantics<arbitrary>], iteration_bounds = array<i64: 1, 1>, scalar_prefetch = 0 : i64, scratch_operands = 2 : i64, tpu.core_type = #tpu.core_type<tc>, window_params = [{transform_indices = @transform_0, window_bounds = array<i64: 2, 8, 128>}, {pipeline_mode = #tpu.pipeline_mode<synchronous>, transform_indices = @transform_1, window_bounds = array<i64: 32, 128>}, {transform_indices = @transform_2, window_bounds = array<i64: 2, 8, 32>}, {transform_indices = @transform_3, window_bounds = array<i64: 2, 32>}, {transform_indices = @transform_4, window_bounds = array<i64: 2, 32>}]} {
    %c0_i32 = arith.constant 0 : i32
    %0 = arith.cmpi eq, %arg1, %c0_i32 : i32
    %1 = arith.extui %0 : i1 to i32
    %c0_i32_0 = arith.constant 0 : i32
    %2 = arith.cmpi ne, %1, %c0_i32_0 : i32
    scf.if %2 {
      %cst_47 = arith.constant 0.000000e+00 : f32
      %197 = vector.broadcast %cst_47 : f32 to vector<2x32xf32>
      %c0_48 = arith.constant 0 : index
      %c0_49 = arith.constant 0 : index
      %198 = vector.load %arg7[%c0_48, %c0_49] : memref<2x32xf32, #tpu.memory_space<vmem>>, vector<2x32xf32>
      tpu.vector_store %arg7[%c0_48, %c0_49], %197 {strides = array<i32>} : memref<2x32xf32, #tpu.memory_space<vmem>>, vector<2x32xf32>,
      %cst_50 = arith.constant 0.000000e+00 : f32
      %199 = vector.broadcast %cst_50 : f32 to vector<2x32xf32>
      %c0_51 = arith.constant 0 : index
      %c0_52 = arith.constant 0 : index
      %200 = vector.load %arg8[%c0_51, %c0_52] : memref<2x32xf32, #tpu.memory_space<vmem>>, vector<2x32xf32>
      tpu.vector_store %arg8[%c0_51, %c0_52], %199 {strides = array<i32>} : memref<2x32xf32, #tpu.memory_space<vmem>>, vector<2x32xf32>,
    } else {
    }
    %c0 = arith.constant 0 : index
    %c0_1 = arith.constant 0 : index
    %3 = vector.load %arg3[%c0, %c0_1] : memref<32x128xbf16, #tpu.memory_space<vmem>>, vector<32x128xbf16>
    %c0_2 = arith.constant 0 : index
    %c0_3 = arith.constant 0 : index
    %4 = vector.load %arg7[%c0_2, %c0_3] : memref<2x32xf32, #tpu.memory_space<vmem>>, vector<2x32xf32>
    %c0_4 = arith.constant 0 : index
    %c0_5 = arith.constant 0 : index
    %5 = vector.load %arg8[%c0_4, %c0_5] : memref<2x32xf32, #tpu.memory_space<vmem>>, vector<2x32xf32>
    %6 = arith.truncf %4 : vector<2x32xf32> to vector<2x32xbf16>
    %cst = arith.constant dense<0.000000e+00> : vector<2x128xf32>
    %7 = tpu.matmul %6, %3, %cst {dimension_numbers = #tpu.dot_dimension_numbers<[1], [0], [0], [1], [0, 0, 1, 1], [], []>} : vector<2x32xbf16>, vector<32x128xbf16>, vector<2x128xf32> -> vector<2x128xf32>
    %c0_6 = arith.constant 0 : index
    %c0_7 = arith.constant 0 : index
    %c0_8 = arith.constant 0 : index
    %8 = vector.load %arg2[%c0_6, %c0_7, %c0_8] : memref<2x8x128xbf16, #tpu.memory_space<vmem>>, vector<2x1x128xbf16>
    %9 = vector.shape_cast %8 : vector<2x1x128xbf16> to vector<2x128xbf16>
    %10 = arith.extf %9 : vector<2x128xbf16> to vector<2x128xf32>
    %11 = arith.addf %10, %7 : vector<2x128xf32>
    %12 = vector.extract_strided_slice %11 {offsets = [0, 0], sizes = [2, 96], strides = [1, 1]} : vector<2x128xf32> to vector<2x96xf32>
    %13 = arith.negf %12 : vector<2x96xf32>
    %14 = math.exp %13 : vector<2x96xf32>
    %cst_9 = arith.constant 1.000000e+00 : f32
    %15 = vector.broadcast %cst_9 : f32 to vector<2x96xf32>
    %16 = arith.addf %15, %14 : vector<2x96xf32>
    %17 = arith.divf %15, %16 : vector<2x96xf32>
    %18 = vector.extract_strided_slice %17 {offsets = [0, 0], sizes = [2, 32], strides = [1, 1]} : vector<2x96xf32> to vector<2x32xf32>
    %19 = vector.extract_strided_slice %17 {offsets = [0, 32], sizes = [2, 32], strides = [1, 1]} : vector<2x96xf32> to vector<2x32xf32>
    %20 = vector.extract_strided_slice %17 {offsets = [0, 64], sizes = [2, 32], strides = [1, 1]} : vector<2x96xf32> to vector<2x32xf32>
    %21 = vector.extract_strided_slice %11 {offsets = [0, 96], sizes = [2, 32], strides = [1, 1]} : vector<2x128xf32> to vector<2x32xf32>
    %22 = math.tanh %21 : vector<2x32xf32>
    %23 = arith.mulf %19, %5 : vector<2x32xf32>
    %24 = arith.mulf %18, %22 : vector<2x32xf32>
    %25 = arith.addf %23, %24 : vector<2x32xf32>
    %26 = math.tanh %25 : vector<2x32xf32>
    %27 = arith.mulf %20, %26 : vector<2x32xf32>
    %28 = arith.truncf %27 : vector<2x32xf32> to vector<2x32xbf16>
    %cst_10 = arith.constant dense<0.000000e+00> : vector<2x128xf32>
    %29 = tpu.matmul %28, %3, %cst_10 {dimension_numbers = #tpu.dot_dimension_numbers<[1], [0], [0], [1], [0, 0, 1, 1], [], []>} : vector<2x32xbf16>, vector<32x128xbf16>, vector<2x128xf32> -> vector<2x128xf32>
    %c0_11 = arith.constant 0 : index
    %c1 = arith.constant 1 : index
    %c0_12 = arith.constant 0 : index
    %30 = vector.load %arg2[%c0_11, %c1, %c0_12] : memref<2x8x128xbf16, #tpu.memory_space<vmem>>, vector<2x1x128xbf16>
    %31 = vector.shape_cast %30 : vector<2x1x128xbf16> to vector<2x128xbf16>
    %32 = arith.extf %31 : vector<2x128xbf16> to vector<2x128xf32>
    %33 = arith.addf %32, %29 : vector<2x128xf32>
    %34 = vector.extract_strided_slice %33 {offsets = [0, 0], sizes = [2, 96], strides = [1, 1]} : vector<2x128xf32> to vector<2x96xf32>
    %35 = arith.negf %34 : vector<2x96xf32>
    %36 = math.exp %35 : vector<2x96xf32>
    %cst_13 = arith.constant 1.000000e+00 : f32
    %37 = vector.broadcast %cst_13 : f32 to vector<2x96xf32>
    %38 = arith.addf %37, %36 : vector<2x96xf32>
    %39 = arith.divf %37, %38 : vector<2x96xf32>
    %40 = vector.extract_strided_slice %39 {offsets = [0, 0], sizes = [2, 32], strides = [1, 1]} : vector<2x96xf32> to vector<2x32xf32>
    %41 = vector.extract_strided_slice %39 {offsets = [0, 32], sizes = [2, 32], strides = [1, 1]} : vector<2x96xf32> to vector<2x32xf32>
    %42 = vector.extract_strided_slice %39 {offsets = [0, 64], sizes = [2, 32], strides = [1, 1]} : vector<2x96xf32> to vector<2x32xf32>
    %43 = vector.extract_strided_slice %33 {offsets = [0, 96], sizes = [2, 32], strides = [1, 1]} : vector<2x128xf32> to vector<2x32xf32>
    %44 = math.tanh %43 : vector<2x32xf32>
    %45 = arith.mulf %41, %25 : vector<2x32xf32>
    %46 = arith.mulf %40, %44 : vector<2x32xf32>
    %47 = arith.addf %45, %46 : vector<2x32xf32>
    %48 = math.tanh %47 : vector<2x32xf32>
    %49 = arith.mulf %42, %48 : vector<2x32xf32>
    %50 = arith.truncf %49 : vector<2x32xf32> to vector<2x32xbf16>
    %cst_14 = arith.constant dense<0.000000e+00> : vector<2x128xf32>
    %51 = tpu.matmul %50, %3, %cst_14 {dimension_numbers = #tpu.dot_dimension_numbers<[1], [0], [0], [1], [0, 0, 1, 1], [], []>} : vector<2x32xbf16>, vector<32x128xbf16>, vector<2x128xf32> -> vector<2x128xf32>
    %c0_15 = arith.constant 0 : index
    %c2 = arith.constant 2 : index
    %c0_16 = arith.constant 0 : index
    %52 = vector.load %arg2[%c0_15, %c2, %c0_16] : memref<2x8x128xbf16, #tpu.memory_space<vmem>>, vector<2x1x128xbf16>
    %53 = vector.shape_cast %52 : vector<2x1x128xbf16> to vector<2x128xbf16>
    %54 = arith.extf %53 : vector<2x128xbf16> to vector<2x128xf32>
    %55 = arith.addf %54, %51 : vector<2x128xf32>
    %56 = vector.extract_strided_slice %55 {offsets = [0, 0], sizes = [2, 96], strides = [1, 1]} : vector<2x128xf32> to vector<2x96xf32>
    %57 = arith.negf %56 : vector<2x96xf32>
    %58 = math.exp %57 : vector<2x96xf32>
    %cst_17 = arith.constant 1.000000e+00 : f32
    %59 = vector.broadcast %cst_17 : f32 to vector<2x96xf32>
    %60 = arith.addf %59, %58 : vector<2x96xf32>
    %61 = arith.divf %59, %60 : vector<2x96xf32>
    %62 = vector.extract_strided_slice %61 {offsets = [0, 0], sizes = [2, 32], strides = [1, 1]} : vector<2x96xf32> to vector<2x32xf32>
    %63 = vector.extract_strided_slice %61 {offsets = [0, 32], sizes = [2, 32], strides = [1, 1]} : vector<2x96xf32> to vector<2x32xf32>
    %64 = vector.extract_strided_slice %61 {offsets = [0, 64], sizes = [2, 32], strides = [1, 1]} : vector<2x96xf32> to vector<2x32xf32>
    %65 = vector.extract_strided_slice %55 {offsets = [0, 96], sizes = [2, 32], strides = [1, 1]} : vector<2x128xf32> to vector<2x32xf32>
    %66 = math.tanh %65 : vector<2x32xf32>
    %67 = arith.mulf %63, %47 : vector<2x32xf32>
    %68 = arith.mulf %62, %66 : vector<2x32xf32>
    %69 = arith.addf %67, %68 : vector<2x32xf32>
    %70 = math.tanh %69 : vector<2x32xf32>
    %71 = arith.mulf %64, %70 : vector<2x32xf32>
    %72 = arith.truncf %71 : vector<2x32xf32> to vector<2x32xbf16>
    %cst_18 = arith.constant dense<0.000000e+00> : vector<2x128xf32>
    %73 = tpu.matmul %72, %3, %cst_18 {dimension_numbers = #tpu.dot_dimension_numbers<[1], [0], [0], [1], [0, 0, 1, 1], [], []>} : vector<2x32xbf16>, vector<32x128xbf16>, vector<2x128xf32> -> vector<2x128xf32>
    %c0_19 = arith.constant 0 : index
    %c3 = arith.constant 3 : index
    %c0_20 = arith.constant 0 : index
    %74 = vector.load %arg2[%c0_19, %c3, %c0_20] : memref<2x8x128xbf16, #tpu.memory_space<vmem>>, vector<2x1x128xbf16>
    %75 = vector.shape_cast %74 : vector<2x1x128xbf16> to vector<2x128xbf16>
    %76 = arith.extf %75 : vector<2x128xbf16> to vector<2x128xf32>
    %77 = arith.addf %76, %73 : vector<2x128xf32>
    %78 = vector.extract_strided_slice %77 {offsets = [0, 0], sizes = [2, 96], strides = [1, 1]} : vector<2x128xf32> to vector<2x96xf32>
    %79 = arith.negf %78 : vector<2x96xf32>
    %80 = math.exp %79 : vector<2x96xf32>
    %cst_21 = arith.constant 1.000000e+00 : f32
    %81 = vector.broadcast %cst_21 : f32 to vector<2x96xf32>
    %82 = arith.addf %81, %80 : vector<2x96xf32>
    %83 = arith.divf %81, %82 : vector<2x96xf32>
    %84 = vector.extract_strided_slice %83 {offsets = [0, 0], sizes = [2, 32], strides = [1, 1]} : vector<2x96xf32> to vector<2x32xf32>
    %85 = vector.extract_strided_slice %83 {offsets = [0, 32], sizes = [2, 32], strides = [1, 1]} : vector<2x96xf32> to vector<2x32xf32>
    %86 = vector.extract_strided_slice %83 {offsets = [0, 64], sizes = [2, 32], strides = [1, 1]} : vector<2x96xf32> to vector<2x32xf32>
    %87 = vector.extract_strided_slice %77 {offsets = [0, 96], sizes = [2, 32], strides = [1, 1]} : vector<2x128xf32> to vector<2x32xf32>
    %88 = math.tanh %87 : vector<2x32xf32>
    %89 = arith.mulf %85, %69 : vector<2x32xf32>
    %90 = arith.mulf %84, %88 : vector<2x32xf32>
    %91 = arith.addf %89, %90 : vector<2x32xf32>
    %92 = math.tanh %91 : vector<2x32xf32>
    %93 = arith.mulf %86, %92 : vector<2x32xf32>
    %94 = arith.truncf %93 : vector<2x32xf32> to vector<2x32xbf16>
    %cst_22 = arith.constant dense<0.000000e+00> : vector<2x128xf32>
    %95 = tpu.matmul %94, %3, %cst_22 {dimension_numbers = #tpu.dot_dimension_numbers<[1], [0], [0], [1], [0, 0, 1, 1], [], []>} : vector<2x32xbf16>, vector<32x128xbf16>, vector<2x128xf32> -> vector<2x128xf32>
    %c0_23 = arith.constant 0 : index
    %c4 = arith.constant 4 : index
    %c0_24 = arith.constant 0 : index
    %96 = vector.load %arg2[%c0_23, %c4, %c0_24] : memref<2x8x128xbf16, #tpu.memory_space<vmem>>, vector<2x1x128xbf16>
    %97 = vector.shape_cast %96 : vector<2x1x128xbf16> to vector<2x128xbf16>
    %98 = arith.extf %97 : vector<2x128xbf16> to vector<2x128xf32>
    %99 = arith.addf %98, %95 : vector<2x128xf32>
    %100 = vector.extract_strided_slice %99 {offsets = [0, 0], sizes = [2, 96], strides = [1, 1]} : vector<2x128xf32> to vector<2x96xf32>
    %101 = arith.negf %100 : vector<2x96xf32>
    %102 = math.exp %101 : vector<2x96xf32>
    %cst_25 = arith.constant 1.000000e+00 : f32
    %103 = vector.broadcast %cst_25 : f32 to vector<2x96xf32>
    %104 = arith.addf %103, %102 : vector<2x96xf32>
    %105 = arith.divf %103, %104 : vector<2x96xf32>
    %106 = vector.extract_strided_slice %105 {offsets = [0, 0], sizes = [2, 32], strides = [1, 1]} : vector<2x96xf32> to vector<2x32xf32>
    %107 = vector.extract_strided_slice %105 {offsets = [0, 32], sizes = [2, 32], strides = [1, 1]} : vector<2x96xf32> to vector<2x32xf32>
    %108 = vector.extract_strided_slice %105 {offsets = [0, 64], sizes = [2, 32], strides = [1, 1]} : vector<2x96xf32> to vector<2x32xf32>
    %109 = vector.extract_strided_slice %99 {offsets = [0, 96], sizes = [2, 32], strides = [1, 1]} : vector<2x128xf32> to vector<2x32xf32>
    %110 = math.tanh %109 : vector<2x32xf32>
    %111 = arith.mulf %107, %91 : vector<2x32xf32>
    %112 = arith.mulf %106, %110 : vector<2x32xf32>
    %113 = arith.addf %111, %112 : vector<2x32xf32>
    %114 = math.tanh %113 : vector<2x32xf32>
    %115 = arith.mulf %108, %114 : vector<2x32xf32>
    %116 = arith.truncf %115 : vector<2x32xf32> to vector<2x32xbf16>
    %cst_26 = arith.constant dense<0.000000e+00> : vector<2x128xf32>
    %117 = tpu.matmul %116, %3, %cst_26 {dimension_numbers = #tpu.dot_dimension_numbers<[1], [0], [0], [1], [0, 0, 1, 1], [], []>} : vector<2x32xbf16>, vector<32x128xbf16>, vector<2x128xf32> -> vector<2x128xf32>
    %c0_27 = arith.constant 0 : index
    %c5 = arith.constant 5 : index
    %c0_28 = arith.constant 0 : index
    %118 = vector.load %arg2[%c0_27, %c5, %c0_28] : memref<2x8x128xbf16, #tpu.memory_space<vmem>>, vector<2x1x128xbf16>
    %119 = vector.shape_cast %118 : vector<2x1x128xbf16> to vector<2x128xbf16>
    %120 = arith.extf %119 : vector<2x128xbf16> to vector<2x128xf32>
    %121 = arith.addf %120, %117 : vector<2x128xf32>
    %122 = vector.extract_strided_slice %121 {offsets = [0, 0], sizes = [2, 96], strides = [1, 1]} : vector<2x128xf32> to vector<2x96xf32>
    %123 = arith.negf %122 : vector<2x96xf32>
    %124 = math.exp %123 : vector<2x96xf32>
    %cst_29 = arith.constant 1.000000e+00 : f32
    %125 = vector.broadcast %cst_29 : f32 to vector<2x96xf32>
    %126 = arith.addf %125, %124 : vector<2x96xf32>
    %127 = arith.divf %125, %126 : vector<2x96xf32>
    %128 = vector.extract_strided_slice %127 {offsets = [0, 0], sizes = [2, 32], strides = [1, 1]} : vector<2x96xf32> to vector<2x32xf32>
    %129 = vector.extract_strided_slice %127 {offsets = [0, 32], sizes = [2, 32], strides = [1, 1]} : vector<2x96xf32> to vector<2x32xf32>
    %130 = vector.extract_strided_slice %127 {offsets = [0, 64], sizes = [2, 32], strides = [1, 1]} : vector<2x96xf32> to vector<2x32xf32>
    %131 = vector.extract_strided_slice %121 {offsets = [0, 96], sizes = [2, 32], strides = [1, 1]} : vector<2x128xf32> to vector<2x32xf32>
    %132 = math.tanh %131 : vector<2x32xf32>
    %133 = arith.mulf %129, %113 : vector<2x32xf32>
    %134 = arith.mulf %128, %132 : vector<2x32xf32>
    %135 = arith.addf %133, %134 : vector<2x32xf32>
    %136 = math.tanh %135 : vector<2x32xf32>
    %137 = arith.mulf %130, %136 : vector<2x32xf32>
    %138 = arith.truncf %137 : vector<2x32xf32> to vector<2x32xbf16>
    %cst_30 = arith.constant dense<0.000000e+00> : vector<2x128xf32>
    %139 = tpu.matmul %138, %3, %cst_30 {dimension_numbers = #tpu.dot_dimension_numbers<[1], [0], [0], [1], [0, 0, 1, 1], [], []>} : vector<2x32xbf16>, vector<32x128xbf16>, vector<2x128xf32> -> vector<2x128xf32>
    %c0_31 = arith.constant 0 : index
    %c6 = arith.constant 6 : index
    %c0_32 = arith.constant 0 : index
    %140 = vector.load %arg2[%c0_31, %c6, %c0_32] : memref<2x8x128xbf16, #tpu.memory_space<vmem>>, vector<2x1x128xbf16>
    %141 = vector.shape_cast %140 : vector<2x1x128xbf16> to vector<2x128xbf16>
    %142 = arith.extf %141 : vector<2x128xbf16> to vector<2x128xf32>
    %143 = arith.addf %142, %139 : vector<2x128xf32>
    %144 = vector.extract_strided_slice %143 {offsets = [0, 0], sizes = [2, 96], strides = [1, 1]} : vector<2x128xf32> to vector<2x96xf32>
    %145 = arith.negf %144 : vector<2x96xf32>
    %146 = math.exp %145 : vector<2x96xf32>
    %cst_33 = arith.constant 1.000000e+00 : f32
    %147 = vector.broadcast %cst_33 : f32 to vector<2x96xf32>
    %148 = arith.addf %147, %146 : vector<2x96xf32>
    %149 = arith.divf %147, %148 : vector<2x96xf32>
    %150 = vector.extract_strided_slice %149 {offsets = [0, 0], sizes = [2, 32], strides = [1, 1]} : vector<2x96xf32> to vector<2x32xf32>
    %151 = vector.extract_strided_slice %149 {offsets = [0, 32], sizes = [2, 32], strides = [1, 1]} : vector<2x96xf32> to vector<2x32xf32>
    %152 = vector.extract_strided_slice %149 {offsets = [0, 64], sizes = [2, 32], strides = [1, 1]} : vector<2x96xf32> to vector<2x32xf32>
    %153 = vector.extract_strided_slice %143 {offsets = [0, 96], sizes = [2, 32], strides = [1, 1]} : vector<2x128xf32> to vector<2x32xf32>
    %154 = math.tanh %153 : vector<2x32xf32>
    %155 = arith.mulf %151, %135 : vector<2x32xf32>
    %156 = arith.mulf %150, %154 : vector<2x32xf32>
    %157 = arith.addf %155, %156 : vector<2x32xf32>
    %158 = math.tanh %157 : vector<2x32xf32>
    %159 = arith.mulf %152, %158 : vector<2x32xf32>
    %160 = arith.truncf %159 : vector<2x32xf32> to vector<2x32xbf16>
    %cst_34 = arith.constant dense<0.000000e+00> : vector<2x128xf32>
    %161 = tpu.matmul %160, %3, %cst_34 {dimension_numbers = #tpu.dot_dimension_numbers<[1], [0], [0], [1], [0, 0, 1, 1], [], []>} : vector<2x32xbf16>, vector<32x128xbf16>, vector<2x128xf32> -> vector<2x128xf32>
    %c0_35 = arith.constant 0 : index
    %c7 = arith.constant 7 : index
    %c0_36 = arith.constant 0 : index
    %162 = vector.load %arg2[%c0_35, %c7, %c0_36] : memref<2x8x128xbf16, #tpu.memory_space<vmem>>, vector<2x1x128xbf16>
    %163 = vector.shape_cast %162 : vector<2x1x128xbf16> to vector<2x128xbf16>
    %164 = arith.extf %163 : vector<2x128xbf16> to vector<2x128xf32>
    %165 = arith.addf %164, %161 : vector<2x128xf32>
    %166 = vector.extract_strided_slice %165 {offsets = [0, 0], sizes = [2, 96], strides = [1, 1]} : vector<2x128xf32> to vector<2x96xf32>
    %167 = arith.negf %166 : vector<2x96xf32>
    %168 = math.exp %167 : vector<2x96xf32>
    %cst_37 = arith.constant 1.000000e+00 : f32
    %169 = vector.broadcast %cst_37 : f32 to vector<2x96xf32>
    %170 = arith.addf %169, %168 : vector<2x96xf32>
    %171 = arith.divf %169, %170 : vector<2x96xf32>
    %172 = vector.extract_strided_slice %171 {offsets = [0, 0], sizes = [2, 32], strides = [1, 1]} : vector<2x96xf32> to vector<2x32xf32>
    %173 = vector.extract_strided_slice %171 {offsets = [0, 32], sizes = [2, 32], strides = [1, 1]} : vector<2x96xf32> to vector<2x32xf32>
    %174 = vector.extract_strided_slice %171 {offsets = [0, 64], sizes = [2, 32], strides = [1, 1]} : vector<2x96xf32> to vector<2x32xf32>
    %175 = vector.extract_strided_slice %165 {offsets = [0, 96], sizes = [2, 32], strides = [1, 1]} : vector<2x128xf32> to vector<2x32xf32>
    %176 = math.tanh %175 : vector<2x32xf32>
    %177 = arith.mulf %173, %157 : vector<2x32xf32>
    %178 = arith.mulf %172, %176 : vector<2x32xf32>
    %179 = arith.addf %177, %178 : vector<2x32xf32>
    %180 = math.tanh %179 : vector<2x32xf32>
    %181 = arith.mulf %174, %180 : vector<2x32xf32>
    %182 = vector.shape_cast %27 : vector<2x32xf32> to vector<2x1x32xf32>
    %183 = vector.shape_cast %49 : vector<2x32xf32> to vector<2x1x32xf32>
    %184 = vector.shape_cast %71 : vector<2x32xf32> to vector<2x1x32xf32>
    %185 = vector.shape_cast %93 : vector<2x32xf32> to vector<2x1x32xf32>
    %186 = vector.shape_cast %115 : vector<2x32xf32> to vector<2x1x32xf32>
    %187 = vector.shape_cast %137 : vector<2x32xf32> to vector<2x1x32xf32>
    %188 = vector.shape_cast %159 : vector<2x32xf32> to vector<2x1x32xf32>
    %189 = vector.shape_cast %181 : vector<2x32xf32> to vector<2x1x32xf32>
    %190 = tpu.concatenate %182, %183, %184, %185, %186, %187, %188, %189 in 1 : vector<2x1x32xf32>, vector<2x1x32xf32>, vector<2x1x32xf32>, vector<2x1x32xf32>, vector<2x1x32xf32>, vector<2x1x32xf32>, vector<2x1x32xf32>, vector<2x1x32xf32> -> vector<2x8x32xf32>
    %c0_38 = arith.constant 0 : index
    %c0_39 = arith.constant 0 : index
    %c0_40 = arith.constant 0 : index
    %191 = vector.load %arg4[%c0_38, %c0_39, %c0_40] : memref<2x8x32xf32, #tpu.memory_space<vmem>>, vector<2x8x32xf32>
    tpu.vector_store %arg4[%c0_38, %c0_39, %c0_40], %190 {strides = array<i32>} : memref<2x8x32xf32, #tpu.memory_space<vmem>>, vector<2x8x32xf32>,
    %c0_41 = arith.constant 0 : index
    %c0_42 = arith.constant 0 : index
    %192 = vector.load %arg7[%c0_41, %c0_42] : memref<2x32xf32, #tpu.memory_space<vmem>>, vector<2x32xf32>
    tpu.vector_store %arg7[%c0_41, %c0_42], %181 {strides = array<i32>} : memref<2x32xf32, #tpu.memory_space<vmem>>, vector<2x32xf32>,
    %c0_43 = arith.constant 0 : index
    %c0_44 = arith.constant 0 : index
    %193 = vector.load %arg8[%c0_43, %c0_44] : memref<2x32xf32, #tpu.memory_space<vmem>>, vector<2x32xf32>
    tpu.vector_store %arg8[%c0_43, %c0_44], %179 {strides = array<i32>} : memref<2x32xf32, #tpu.memory_space<vmem>>, vector<2x32xf32>,
    %c0_i32_45 = arith.constant 0 : i32
    %194 = arith.cmpi eq, %arg1, %c0_i32_45 : i32
    %195 = arith.extui %194 : i1 to i32
    %c0_i32_46 = arith.constant 0 : i32
    %196 = arith.cmpi ne, %195, %c0_i32_46 : i32
    scf.if %196 {
      %c0_47 = arith.constant 0 : index
      %c0_48 = arith.constant 0 : index
      %197 = vector.load %arg5[%c0_47, %c0_48] : memref<2x32xf32, #tpu.memory_space<vmem>>, vector<2x32xf32>
      tpu.vector_store %arg5[%c0_47, %c0_48], %181 {strides = array<i32>} : memref<2x32xf32, #tpu.memory_space<vmem>>, vector<2x32xf32>,
      %c0_49 = arith.constant 0 : index
      %c0_50 = arith.constant 0 : index
      %198 = vector.load %arg6[%c0_49, %c0_50] : memref<2x32xf32, #tpu.memory_space<vmem>>, vector<2x32xf32>
      tpu.vector_store %arg6[%c0_49, %c0_50], %179 {strides = array<i32>} : memref<2x32xf32, #tpu.memory_space<vmem>>, vector<2x32xf32>,
    } else {
    }
    return
  }
  func.func @transform_0(%arg0: i32, %arg1: i32) -> (i32, i32, i32) {
    %c0_i32 = arith.constant 0 : i32
    %c0_i32_0 = arith.constant 0 : i32
    return %arg0, %arg1, %c0_i32 : i32, i32, i32
  }
  func.func @transform_1(%arg0: i32, %arg1: i32) -> (i32, i32) {
    %c0_i32 = arith.constant 0 : i32
    %c0_i32_0 = arith.constant 0 : i32
    %c0_i32_1 = arith.constant 0 : i32
    return %c0_i32, %c0_i32_0 : i32, i32
  }
  func.func @transform_2(%arg0: i32, %arg1: i32) -> (i32, i32, i32) {
    %c0_i32 = arith.constant 0 : i32
    %c0_i32_0 = arith.constant 0 : i32
    return %arg0, %arg1, %c0_i32 : i32, i32, i32
  }
  func.func @transform_3(%arg0: i32, %arg1: i32) -> (i32, i32) {
    %c0_i32 = arith.constant 0 : i32
    %c0_i32_0 = arith.constant 0 : i32
    return %arg0, %c0_i32 : i32, i32
  }
  func.func @transform_4(%arg0: i32, %arg1: i32) -> (i32, i32) {
    %c0_i32 = arith.constant 0 : i32
    %c0_i32_0 = arith.constant 0 : i32
    return %arg0, %c0_i32 : i32, i32
  }
}

</mosaic_0001>

<bundles_post_ra>
// kernel: tpu_custom_call.1
= control target key start
LH: loop header
LB: loop body
LE: loop exit
PB: predicated region body
PF: predicated region fallthrough
CT: control target
= control target key end

     0   :  { %10 = vsyncpa [#allocation5], 0  ;;  %s1718_s0 = inlined_call_operand.hbm [shape: bf16[2,8,128], index: 0, kind: input, shape index: {}]   ;;  %s1719_s1 = inlined_call_operand.hbm [shape: bf16[32,128], index: 1, kind: input, shape index: {}]   ;;  %s1720_s2 = inlined_call_operand.hbm [shape: f32[2,8,32], index: 2, kind: output, shape index: {0}]   ;;  %s1721_s3 = inlined_call_operand.hbm [shape: f32[2,32], index: 3, kind: output, shape index: {1}]   ;;  %s1722_s4 = inlined_call_operand.hbm [shape: f32[2,32], index: 4, kind: output, shape index: {2}]  }
   0x1   :  { %11 = vsyncpa [#allocation8], 0 }
   0x2   :  { %12 = vsyncpa [#allocation6], 0 }
   0x3   :  { %13 = vsyncpa [#allocation11], 0  ;;  %s18_s17 = sshll.u32 %s1718_s0, 4  ;;  %s1414_s18 = smov [#allocation4]   ;;  %s19_s17 = int_to_ptr.hbm [resolvable:$true] %s18_s17 }
   0x4   :  { %s20_s19 = sshll.u32 %s1414_s18, 4  ;;  %s31_s22 = sshll.u32 %s1719_s1, 4  ;;  %s21_s19 = int_to_ptr.vmem [resolvable:$true] %s20_s19  ;;  %s32_s22 = int_to_ptr.hbm [resolvable:$true] %s31_s22 }
   0x5   :  { %s1415_s23 = smov 64   ;;  %s1416_s24 = smov 4  }
   0x6   :  { %26 = dma.hbm_to_vmem [thread:$0]  %s19_s17, 128, %s21_s19, [#allocation5], %s1415_s23, %s1415_s23, %s1416_s24  }
   0x7   :  { %s1417_s25 = smov [#allocation7]  }
   0x8   :  { %s33_s26 = sshll.u32 %s1417_s25, 4  ;;  %s34_s26 = int_to_ptr.vmem [resolvable:$true] %s33_s26 }
   0x9   :  { %39 = dma.hbm_to_vmem [thread:$0]  %s32_s22, 256, %s34_s26, [#allocation8], %s1415_s23, %s1415_s23, %s1416_s24  }
   0xa   :  { %1406 = dma.done.wait [#allocation5], 128  }
   0xb   :  { %1407 = vsyncadd [#allocation5], 4294967168 }
   0xc   :  { %1408 = dma.done.wait [#allocation8], 256  }
   0xd   :  { %1409 = vsyncadd [#allocation8], 4294967040  ;;  %vm53_vm0 = vcmask 254976   ;;  %v1418_v0 = vmov 0.0   ;;  %v1145_v1 = vld [vmem:[#allocation7 + $0x8] sm:$0xff]  ;;  %v1144_v2 = vld [vmem:[#allocation7] sm:$0xff] }
   0xe   :  { %54 = vst.msk [vmem:[#allocation2] sm:$0x3] %vm53_vm0, %v1418_v0  ;;  %85 = vmatpush.bf16.msra.mxu0 %v1145_v1  ;;  %205 = vmatpush.bf16.msra.mxu1 %v1145_v1  ;;  %s1419_s0 = smov 32   ;;  %vm75_vm1 = vcmask 261120   ;;  %v1464_v7 = vld [vmem:[#allocation4 + $0x4] sm:$0x1] }
   0xf   :  { %55 = vst.msk [vmem:[#allocation3] sm:$0x3] %vm53_vm0, %v1418_v0  ;;  %318 = vmatpush.bf16.msra.mxu2 %v1145_v1  ;;  %437 = vmatpush.bf16.msra.mxu3 %v1145_v1  ;;  %v95_v8 = vunpack.c.l.bf16 %v1464_v7  ;;  %v1467_v11 = vld [vmem:[#allocation4] sm:$0x1]  ;;  %vm191_vm10 = vcmask 1041409   ;;  %s1420_s1 = smov 96  }
  0x10   :  { %v94_v13 = vunpack.c.l.bf16 %v1467_v11  ;;  %s1421_s27 = smov [#allocation10]   ;;  %s1081_s5 = sshll.u32 %s1721_s3, 4  ;;  %s1082_s5 = int_to_ptr.hbm [resolvable:$true] %s1081_s5 }
  0x11   :  { %s1079_s28 = sshll.u32 %s1421_s27, 4  ;;  %s1067_s8 = sshll.u32 %s1720_s2, 4  ;;  %s1080_s28 = int_to_ptr.vmem [resolvable:$true] %s1079_s28  ;;  %s1068_s8 = int_to_ptr.hbm [resolvable:$true] %s1067_s8 }
  0x12   :  { %86 = vmatpush.bf16.msra.mxu0 %v1144_v2  ;;  %206 = vmatpush.bf16.msra.mxu1 %v1144_v2  ;;  %s1422_s9 = smov [#allocation9]   ;;  %s1423_s3 = smov [#allocation12]  }
  0x13   :  { %319 = vmatpush.bf16.msra.mxu2 %v1144_v2  ;;  %438 = vmatpush.bf16.msra.mxu3 %v1144_v2  ;;  %s1065_s10 = sshll.u32 %s1422_s9, 4  ;;  %s1090_s11 = sshll.u32 %s1423_s3, 4  ;;  %s1066_s10 = int_to_ptr.vmem [resolvable:$true] %s1065_s10  ;;  %s1091_s11 = int_to_ptr.vmem [resolvable:$true] %s1090_s11 }
  0x14   :  { %s1092_s2 = sshll.u32 %s1722_s4, 4  ;;  %s1424_s14 = smov 128   ;;  %s1093_s2 = int_to_ptr.hbm [resolvable:$true] %s1092_s2 }
  0x15   :  { %v60_v3 = vld [vmem:[#allocation2] sm:$0x3]  ;;  %s1425_s15 = smov 8  }
  0x16   :  { %v61_v4 = vld [vmem:[#allocation3] sm:$0x3]  ;;  %v62_v6 = vpack.c.bf16 %v60_v3, %v60_v3  ;;  %552 = vmatpush.bf16.msrb.mxu0 %v1145_v1  ;;  %671 = vmatpush.bf16.msrb.mxu1 %v1145_v1 }
  0x17   :  { %v143_v5 = vrot.slane %v61_v4, 1  ;;  %786 = vmatpush.bf16.msrb.mxu2 %v1145_v1  ;;  %905 = vmatpush.bf16.msrb.mxu3 %v1145_v1 }
  0x18   :  { %1120 = vmatmul.msk.bf16.vlgmr.msra.gmra.mxu0 %vm75_vm1, %v62_v6 }
  0x19   :  { %146 = vrot.lane.b32.xlu1 %v143_v5, %s1419_s0 }
  0x1a   :  { %553 = vmatpush.bf16.msrb.mxu0 %v1144_v2  ;;  %672 = vmatpush.bf16.msrb.mxu1 %v1144_v2 }
  0x1b   :  { %787 = vmatpush.bf16.msrb.mxu2 %v1144_v2  ;;  %906 = vmatpush.bf16.msrb.mxu3 %v1144_v2 }
  0x21   :  { %144 = vrot.lane.b32.xlu1 %v61_v4, %s1419_s0 }
  0x8b   :  { %v147_v48 = vpop.permute.xlu1 %146 }
  0x93   :  { %v145_v52 = vpop.permute.xlu1 %144 }
  0x95   :  { %v88_v9 = vpop.f32.mrf.mxu0 }
  0x96   :  { %v97_v10 = vrot.slane %v88_v9, 1  ;;  %v100_v15 = vadd.f32 %v94_v13, %v88_v9 }
  0x98   :  { %v101_v12 = vadd.f32 %v97_v10, %v95_v8  ;;  %v1121_v19 = vmul.f32 -1.442695, %v100_v15 }
  0x9a   :  { %1158 = vtanh.f32 %v101_v12  ;;  %v1122_v18 = vmul.f32 -1.442695, %v101_v12 }
  0x9b   :  { %1160 = vtanh.f32 %v100_v15 }
  0x9c   :  { %1162 = vpow2.f32 %v1122_v18 }
  0x9d   :  { %v90_v14 = vpop.f32.mrf.mxu0  ;;  %1164 = vpow2.f32 %v1121_v19 }
  0xa0   :  { %v1159_v16 = vpop.eup %1158 }
  0xa1   :  { %156 = vrot.lane.b32.xlu0 %v1159_v16, %s1419_s0  ;;  %v1161_v17 = vpop.eup %1160 }
  0xa2   :  { %v1163_v20 = vpop.eup %1162 }
  0xa3   :  { %v109_v21 = vadd.f32 1.0, %v1163_v20  ;;  %v1165_v22 = vpop.eup %1164 }
  0xa4   :  { %v108_v23 = vadd.f32 1.0, %v1165_v22 }
  0xa5   :  { %1166 = vrcp.f32 %v109_v21  ;;  %v136_v32 = vand.u32 2147483648, %v109_v21  ;;  %vm130_vm3 = vweird.f32 %v109_v21  ;;  %v134_v33 = vand.u32 2147483647, %v109_v21 }
  0xa6   :  { %1168 = vrcp.f32 %v108_v23  ;;  %v121_v41 = vand.u32 2147483648, %v108_v23  ;;  %vm115_vm7 = vweird.f32 %v108_v23  ;;  %v119_v42 = vand.u32 2147483647, %v108_v23 }
  0xa7   :  { %v137_v36 = vor.u32 1.1754944e-38, %v136_v32  ;;  %vm135_vm5 = vcmp.eq.f32.partialorder %v134_v33, 8.507059e+37 }
  0xa8   :  { %v122_v44 = vor.u32 1.1754944e-38, %v121_v41  ;;  %vm120_vm9 = vcmp.eq.f32.partialorder %v119_v42, 8.507059e+37 }
  0xa9   :  { %154 = vrot.lane.b32.xlu0 %v1161_v17, %s1419_s0 }
  0xab   :  { %v1167_v24 = vpop.eup %1166 }
  0xac   :  { %v126_v25 = vmul.f32 %v1167_v24, %v109_v21  ;;  %v1169_v27 = vpop.eup %1168  ;;  %vm131_vm2 = vweird.f32 %v1167_v24 }
  0xad   :  { %v111_v29 = vmul.f32 %v1169_v27, %v108_v23  ;;  %vm132_vm4 = vmor %vm130_vm3, %vm131_vm2  ;;  %vm116_vm6 = vweird.f32 %v1169_v27 }
  0xae   :  { %v127_v26 = vsub.f32 1.0, %v126_v25  ;;  %vm117_vm8 = vmor %vm115_vm7, %vm116_vm6 }
  0xaf   :  { %v112_v31 = vsub.f32 1.0, %v111_v29 }
  0xb0   :  { %v128_v28 = vmul.f32 %v1167_v24, %v127_v26 }
  0xb1   :  { %v113_v35 = vmul.f32 %v1169_v27, %v112_v31 }
  0xb2   :  { %v129_v30 = vadd.f32 %v1167_v24, %v128_v28 }
  0xb3   :  { %v114_v39 = vadd.f32 %v1169_v27, %v113_v35 }
  0xb4   :  { %v133_v34 = vsel %vm132_vm4, %v1167_v24, %v129_v30 }
  0xb5   :  { %v138_v37 = vsel %vm135_vm5, %v137_v36, %v133_v34  ;;  %v118_v43 = vsel %vm117_vm8, %v1169_v27, %v114_v39 }
  0xb6   :  { %v123_v45 = vsel %vm120_vm9, %v122_v44, %v118_v43  ;;  %v151_v49 = vmul.f32 %v147_v48, %v138_v37 }
  0xb7   :  { %v150_v53 = vmul.f32 %v145_v52, %v123_v45 }
 0x113   :  { %v157_v38 = vpop.permute.xlu0 %156 }
 0x114   :  { %v161_v40 = vmul.f32 %v157_v38, %v138_v37 }
 0x116   :  { %166 = vrot.lane.b32.xlu2 %v161_v40, %s1419_s0 }
 0x11b   :  { %v155_v46 = vpop.permute.xlu0 %154 }
 0x11c   :  { %v160_v47 = vmul.f32 %v155_v46, %v123_v45 }
 0x11e   :  { %164 = vrot.lane.b32.xlu2 %v160_v47, %s1419_s0 }
 0x170   :  { %v167_v50 = vpop.permute.xlu2 %166 }
 0x171   :  { %v1478_v51 = vadd.f32 %v167_v50, %v151_v49 }
 0x173   :  { %1170 = vtanh.f32 %v1478_v51  ;;  %v261_v48 = vrot.slane %v1478_v51, 7 }
 0x178   :  { %v165_v54 = vpop.permute.xlu2 %164 }
 0x179   :  { %v1171_v55 = vpop.eup %1170  ;;  %v1481_v56 = vadd.f32 %v165_v54, %v150_v53 }
 0x17a   :  { %178 = vrot.lane.b32.xlu0 %v1171_v55, %s1419_s0 }
 0x17b   :  { %1172 = vtanh.f32 %v1481_v56  ;;  %v260_v43 = vrot.slane %v1481_v56, 7 }
 0x181   :  { %v1173_v57 = vpop.eup %1172 }
 0x182   :  { %176 = vrot.lane.b32.xlu1 %v1173_v57, %s1419_s0 }
 0x1ec   :  { %v179_v58 = vpop.permute.xlu0 %178 }
 0x1ed   :  { %v1486_v59 = vmul.f32 %v179_v58, %v138_v37 }
 0x1ef   :  { %v185_v60 = vpack.c.bf16 %v1486_v59, %v1486_v59 }
 0x1f1   :  { %v189_v62 = vunpack.c.l.b16 %v185_v60 }
 0x1f3   :  { %v190_v1 = vrot.slane %v189_v62, 7 }
 0x1f4   :  { %v177_v61 = vpop.permute.xlu1 %176 }
 0x1f5   :  { %v1490_v63 = vmul.f32 %v177_v61, %v123_v45 }
 0x1f7   :  { %v184_v0 = vpack.c.bf16 %v1490_v63, %v1490_v63 }
 0x1f9   :  { %v188_v2 = vunpack.c.l.b16 %v184_v0 }
 0x1fb   :  { %v192_v3 = vsel %vm191_vm10, %v190_v1, %v188_v2 }
 0x1fc   :  { %v193_v4 = vpack.c.b16 %v192_v3, %v192_v3  ;;  %v1526_v3 = vld [vmem:[#allocation4] sm:$0x2] }
 0x1fe   :  { %194 = vrot.lane.b32.xlu2 %v193_v4, %s1415_s23  ;;  %v1528_v4 = vld [vmem:[#allocation4 + $0x4] sm:$0x2] }
 0x258   :  { %v195_v5 = vpop.permute.xlu2 %194 }
 0x259   :  { %1123 = vmatmul.msk.bf16.vlgmr.msra.gmra.mxu1 %vm75_vm1, %v195_v5  ;;  %v327_v5 = vunpack.c.l.bf16 %v1526_v3 }
 0x2d6   :  { %v208_v6 = vpop.f32.mrf.mxu1 }
 0x2d7   :  { %v213_v9 = vrot.slane %v208_v6, 7  ;;  %v217_v10 = vadd.f32 %v208_v6, %v95_v8  ;;  %v328_v6 = vunpack.c.l.bf16 %v1528_v4 }
 0x2d9   :  { %v216_v12 = vadd.f32 %v213_v9, %v94_v13  ;;  %1174 = vtanh.f32 %v217_v10  ;;  %v1125_v17 = vmul.f32 -1.442695, %v217_v10 }
 0x2db   :  { %1176 = vtanh.f32 %v216_v12  ;;  %v1124_v18 = vmul.f32 -1.442695, %v216_v12 }
 0x2dc   :  { %1178 = vpow2.f32 %v1125_v17 }
 0x2dd   :  { %1180 = vpow2.f32 %v1124_v18 }
 0x2de   :  { %v210_v14 = vpop.f32.mrf.mxu1 }
 0x2df   :  { %v1175_v15 = vpop.eup %1174 }
 0x2e0   :  { %270 = vrot.lane.b32.xlu1 %v1175_v15, %s1419_s0 }
 0x2e1   :  { %v1177_v16 = vpop.eup %1176 }
 0x2e2   :  { %268 = vrot.lane.b32.xlu0 %v1177_v16, %s1419_s0  ;;  %v1179_v19 = vpop.eup %1178 }
 0x2e3   :  { %v1181_v20 = vpop.eup %1180  ;;  %v225_v7 = vadd.f32 1.0, %v1179_v19 }
 0x2e4   :  { %v224_v8 = vadd.f32 1.0, %v1181_v20 }
 0x2e5   :  { %1182 = vrcp.f32 %v225_v7  ;;  %v252_v28 = vand.u32 2147483648, %v225_v7  ;;  %vm246_vm12 = vweird.f32 %v225_v7  ;;  %v250_v29 = vand.u32 2147483647, %v225_v7 }
 0x2e6   :  { %1184 = vrcp.f32 %v224_v8  ;;  %v237_v32 = vand.u32 2147483648, %v224_v8  ;;  %vm231_vm15 = vweird.f32 %v224_v8  ;;  %v235_v34 = vand.u32 2147483647, %v224_v8 }
 0x2e7   :  { %v253_v33 = vor.u32 1.1754944e-38, %v252_v28  ;;  %vm251_vm0 = vcmp.eq.f32.partialorder %v250_v29, 8.507059e+37 }
 0x2e8   :  { %v238_v39 = vor.u32 1.1754944e-38, %v237_v32  ;;  %vm236_vm3 = vcmp.eq.f32.partialorder %v235_v34, 8.507059e+37 }
 0x2eb   :  { %v1183_v11 = vpop.eup %1182 }
 0x2ec   :  { %v1185_v13 = vpop.eup %1184  ;;  %v242_v21 = vmul.f32 %v1183_v11, %v225_v7  ;;  %vm247_vm11 = vweird.f32 %v1183_v11 }
 0x2ed   :  { %v227_v22 = vmul.f32 %v1185_v13, %v224_v8  ;;  %vm248_vm13 = vmor %vm246_vm12, %vm247_vm11  ;;  %vm232_vm14 = vweird.f32 %v1185_v13 }
 0x2ee   :  { %v243_v23 = vsub.f32 1.0, %v242_v21  ;;  %vm233_vm2 = vmor %vm231_vm15, %vm232_vm14  ;;  %vm1002_vm14 = vcmask 1041408  }
 0x2ef   :  { %v228_v24 = vsub.f32 1.0, %v227_v22 }
 0x2f0   :  { %v244_v25 = vmul.f32 %v1183_v11, %v243_v23 }
 0x2f1   :  { %v229_v26 = vmul.f32 %v1185_v13, %v228_v24 }
 0x2f2   :  { %v245_v27 = vadd.f32 %v1183_v11, %v244_v25 }
 0x2f3   :  { %v230_v30 = vadd.f32 %v1185_v13, %v229_v26 }
 0x2f4   :  { %v249_v31 = vsel %vm248_vm13, %v1183_v11, %v245_v27  ;;  %vm999_vm13 = vcmask 1040384  }
 0x2f5   :  { %v254_v36 = vsel %vm251_vm0, %v253_v33, %v249_v31  ;;  %v234_v37 = vsel %vm233_vm2, %v1185_v13, %v230_v30 }
 0x2f6   :  { %v239_v41 = vsel %vm236_vm3, %v238_v39, %v234_v37  ;;  %v265_v49 = vmul.f32 %v261_v48, %v254_v36 }
 0x2f7   :  { %v264_v44 = vmul.f32 %v260_v43, %v239_v41 }
 0x352   :  { %v271_v35 = vpop.permute.xlu1 %270 }
 0x353   :  { %v275_v38 = vmul.f32 %v271_v35, %v254_v36 }
 0x354   :  { %v269_v40 = vpop.permute.xlu0 %268 }
 0x355   :  { %280 = vrot.lane.b32.xlu0 %v275_v38, %s1419_s0  ;;  %v274_v42 = vmul.f32 %v269_v40, %v239_v41 }
 0x357   :  { %278 = vrot.lane.b32.xlu2 %v274_v42, %s1419_s0 }
 0x3b1   :  { %v279_v45 = vpop.permute.xlu2 %278 }
 0x3b2   :  { %v1506_v46 = vadd.f32 %v279_v45, %v264_v44 }
 0x3b4   :  { %1186 = vtanh.f32 %v1506_v46 }
 0x3ba   :  { %v1187_v47 = vpop.eup %1186 }
 0x3bb   :  { %290 = vrot.lane.b32.xlu1 %v1187_v47, %s1419_s0 }
 0x3c7   :  { %v281_v50 = vpop.permute.xlu0 %280 }
 0x3c8   :  { %v1511_v52 = vadd.f32 %v281_v50, %v265_v49 }
 0x3ca   :  { %1188 = vtanh.f32 %v1511_v52  ;;  %v379_v45 = vrot.slane %v1511_v52, 7 }
 0x3d0   :  { %v1189_v53 = vpop.eup %1188 }
 0x3d1   :  { %292 = vrot.lane.b32.xlu2 %v1189_v53, %s1419_s0  ;;  %v378_v53 = vrot.slane %v1506_v46, 7 }
 0x42b   :  { %v293_v54 = vpop.permute.xlu2 %292 }
 0x42c   :  { %v1515_v55 = vmul.f32 %v293_v54, %v254_v36 }
 0x42d   :  { %v291_v56 = vpop.permute.xlu1 %290 }
 0x42e   :  { %v1517_v57 = vmul.f32 %v291_v56, %v239_v41  ;;  %v299_v58 = vpack.c.bf16 %v1515_v55, %v1515_v55  ;;  %v1001_v46 = vsel %vm999_vm13, %v1486_v59, %v1515_v55 }
 0x430   :  { %v298_v51 = vpack.c.bf16 %v1517_v57, %v1517_v57  ;;  %v303_v61 = vunpack.c.l.b16 %v299_v58 }
 0x432   :  { %v302_v60 = vunpack.c.l.b16 %v298_v51 }
 0x434   :  { %v304_v62 = vrot.slane %v302_v60, 1 }
 0x436   :  { %v305_v0 = vsel %vm191_vm10, %v303_v61, %v304_v62  ;;  %v1000_v62 = vsel %vm999_vm13, %v1490_v63, %v1517_v57 }
 0x437   :  { %v306_v1 = vpack.c.b16 %v305_v0, %v305_v0 }
 0x439   :  { %307 = vrot.lane.b32.xlu0 %v306_v1, %s1415_s23 }
 0x4ab   :  { %v308_v2 = vpop.permute.xlu0 %307 }
 0x4ac   :  { %1126 = vmatmul.msk.bf16.vlgmr.msra.gmra.mxu2 %vm75_vm1, %v308_v2 }
 0x52f   :  { %v321_v9 = vpop.f32.mrf.mxu2 }
 0x530   :  { %v330_v10 = vrot.slane %v321_v9, 6  ;;  %v331_v12 = vrot.slane %v321_v9, 7 }
 0x532   :  { %v334_v14 = vadd.f32 %v330_v10, %v327_v5  ;;  %v335_v15 = vadd.f32 %v331_v12, %v328_v6 }
 0x534   :  { %1190 = vtanh.f32 %v334_v14  ;;  %v1128_v19 = vmul.f32 -1.442695, %v335_v15  ;;  %v1127_v11 = vmul.f32 -1.442695, %v334_v14 }
 0x535   :  { %1192 = vtanh.f32 %v335_v15 }
 0x536   :  { %1194 = vpow2.f32 %v1128_v19 }
 0x537   :  { %v323_v16 = vpop.f32.mrf.mxu2 }
 0x53a   :  { %v1191_v17 = vpop.eup %1190 }
 0x53b   :  { %v1193_v18 = vpop.eup %1192  ;;  %386 = vrot.lane.b32.xlu1 %v1191_v17, %s1419_s0 }
 0x53c   :  { %388 = vrot.lane.b32.xlu2 %v1193_v18, %s1419_s0  ;;  %v1195_v20 = vpop.eup %1194 }
 0x53d   :  { %v343_v7 = vadd.f32 1.0, %v1195_v20 }
 0x53f   :  { %1196 = vrcp.f32 %v343_v7  ;;  %v370_v26 = vand.u32 2147483648, %v343_v7  ;;  %vm364_vm5 = vweird.f32 %v343_v7  ;;  %v368_v27 = vand.u32 2147483647, %v343_v7 }
 0x540   :  { %1198 = vpow2.f32 %v1127_v11 }
 0x541   :  { %v371_v29 = vor.u32 1.1754944e-38, %v370_v26  ;;  %vm369_vm7 = vcmp.eq.f32.partialorder %v368_v27, 8.507059e+37 }
 0x545   :  { %v1197_v8 = vpop.eup %1196 }
 0x546   :  { %v360_v13 = vmul.f32 %v1197_v8, %v343_v7  ;;  %v1199_v22 = vpop.eup %1198  ;;  %vm365_vm4 = vweird.f32 %v1197_v8 }
 0x547   :  { %v342_v24 = vadd.f32 1.0, %v1199_v22  ;;  %vm366_vm6 = vmor %vm364_vm5, %vm365_vm4 }
 0x548   :  { %v361_v21 = vsub.f32 1.0, %v360_v13 }
 0x549   :  { %1200 = vrcp.f32 %v342_v24  ;;  %v355_v38 = vand.u32 2147483648, %v342_v24  ;;  %vm349_vm9 = vweird.f32 %v342_v24  ;;  %v353_v39 = vand.u32 2147483647, %v342_v24 }
 0x54a   :  { %v362_v23 = vmul.f32 %v1197_v8, %v361_v21 }
 0x54b   :  { %v356_v41 = vor.u32 1.1754944e-38, %v355_v38  ;;  %vm354_vm12 = vcmp.eq.f32.partialorder %v353_v39, 8.507059e+37 }
 0x54c   :  { %v363_v25 = vadd.f32 %v1197_v8, %v362_v23 }
 0x54e   :  { %v367_v28 = vsel %vm366_vm6, %v1197_v8, %v363_v25 }
 0x54f   :  { %v372_v31 = vsel %vm369_vm7, %v371_v29, %v367_v28  ;;  %v1201_v32 = vpop.eup %1200 }
 0x550   :  { %v345_v34 = vmul.f32 %v1201_v32, %v342_v24  ;;  %vm350_vm8 = vweird.f32 %v1201_v32  ;;  %v383_v47 = vmul.f32 %v379_v45, %v372_v31 }
 0x551   :  { %vm351_vm11 = vmor %vm349_vm9, %vm350_vm8  ;;  %vm1005_vm8 = vcmask 1042432  }
 0x552   :  { %v346_v35 = vsub.f32 1.0, %v345_v34 }
 0x554   :  { %v347_v36 = vmul.f32 %v1201_v32, %v346_v35 }
 0x556   :  { %v348_v37 = vadd.f32 %v1201_v32, %v347_v36 }
 0x558   :  { %v352_v40 = vsel %vm351_vm11, %v1201_v32, %v348_v37 }
 0x559   :  { %v357_v43 = vsel %vm354_vm12, %v356_v41, %v352_v40 }
 0x55a   :  { %v382_v54 = vmul.f32 %v378_v53, %v357_v43 }
 0x596   :  { %v389_v30 = vpop.permute.xlu2 %388 }
 0x597   :  { %v393_v33 = vmul.f32 %v389_v30, %v372_v31 }
 0x599   :  { %398 = vrot.lane.b32.xlu1 %v393_v33, %s1419_s0 }
 0x5ad   :  { %v387_v42 = vpop.permute.xlu1 %386 }
 0x5ae   :  { %v392_v44 = vmul.f32 %v387_v42, %v357_v43 }
 0x5b0   :  { %396 = vrot.lane.b32.xlu0 %v392_v44, %s1419_s0 }
 0x60b   :  { %v399_v48 = vpop.permute.xlu1 %398 }
 0x60c   :  { %v1541_v49 = vadd.f32 %v399_v48, %v383_v47 }
 0x60e   :  { %1202 = vtanh.f32 %v1541_v49  ;;  %v494_v48 = vrot.slane %v1541_v49, 7 }
 0x614   :  { %v1203_v50 = vpop.eup %1202 }
 0x615   :  { %410 = vrot.lane.b32.xlu0 %v1203_v50, %s1419_s0 }
 0x622   :  { %v397_v56 = vpop.permute.xlu0 %396 }
 0x623   :  { %v1546_v58 = vadd.f32 %v397_v56, %v382_v54 }
 0x625   :  { %1204 = vtanh.f32 %v1546_v58  ;;  %v493_v47 = vrot.slane %v1546_v58, 7 }
 0x62b   :  { %v1205_v51 = vpop.eup %1204 }
 0x62c   :  { %408 = vrot.lane.b32.xlu2 %v1205_v51, %s1419_s0 }
 0x686   :  { %v409_v52 = vpop.permute.xlu2 %408 }
 0x687   :  { %v411_v60 = vpop.permute.xlu0 %410  ;;  %v414_v61 = vmul.f32 %v409_v52, %v357_v43 }
 0x688   :  { %v415_v0 = vmul.f32 %v411_v60, %v372_v31 }
 0x689   :  { %v416_v1 = vpack.c.bf16 %v414_v61, %v414_v61  ;;  %v1554_v2 = vsel %vm1002_vm14, %v1000_v62, %v414_v61 }
 0x68a   :  { %v417_v9 = vpack.c.bf16 %v415_v0, %v415_v0  ;;  %v1556_v10 = vsel %vm1002_vm14, %v1001_v46, %v415_v0 }
 0x68b   :  { %v420_v12 = vunpack.c.l.b16 %v416_v1 }
 0x68c   :  { %v421_v14 = vunpack.c.l.b16 %v417_v9 }
 0x68d   :  { %v422_v15 = vrot.slane %v420_v12, 2 }
 0x68e   :  { %v423_v16 = vrot.slane %v421_v14, 1 }
 0x690   :  { %v424_v17 = vsel %vm191_vm10, %v423_v16, %v422_v15 }
 0x691   :  { %v425_v18 = vpack.c.b16 %v424_v17, %v424_v17 }
 0x693   :  { %426 = vrot.lane.b32.xlu1 %v425_v18, %s1415_s23 }
 0x705   :  { %v427_v63 = vpop.permute.xlu1 %426 }
 0x706   :  { %1129 = vmatmul.msk.bf16.vlgmr.msra.gmra.mxu3 %vm75_vm1, %v427_v63 }
 0x789   :  { %v440_v57 = vpop.f32.mrf.mxu3 }
 0x78a   :  { %v445_v59 = vrot.slane %v440_v57, 5  ;;  %v446_v55 = vrot.slane %v440_v57, 6 }
 0x78c   :  { %v449_v19 = vadd.f32 %v445_v59, %v327_v5  ;;  %v450_v20 = vadd.f32 %v446_v55, %v328_v6  ;;  %v1588_v59 = vld [vmem:[#allocation4] sm:$0x4] }
 0x78d   :  { %v561_v55 = vunpack.c.l.bf16 %v1588_v59 }
 0x78e   :  { %1206 = vtanh.f32 %v449_v19  ;;  %v1130_v13 = vmul.f32 -1.442695, %v449_v19  ;;  %v1131_v3 = vmul.f32 -1.442695, %v450_v20 }
 0x78f   :  { %1208 = vtanh.f32 %v450_v20 }
 0x790   :  { %1210 = vpow2.f32 %v1130_v13 }
 0x791   :  { %v442_v7 = vpop.f32.mrf.mxu3 }
 0x794   :  { %v1207_v8 = vpop.eup %1206 }
 0x795   :  { %v1209_v11 = vpop.eup %1208  ;;  %501 = vrot.lane.b32.xlu2 %v1207_v8, %s1419_s0 }
 0x796   :  { %503 = vrot.lane.b32.xlu0 %v1209_v11, %s1419_s0  ;;  %v1211_v21 = vpop.eup %1210 }
 0x797   :  { %v457_v22 = vadd.f32 1.0, %v1211_v21 }
 0x799   :  { %1212 = vrcp.f32 %v457_v22  ;;  %v470_v27 = vand.u32 2147483648, %v457_v22  ;;  %vm464_vm0 = vweird.f32 %v457_v22  ;;  %v468_v28 = vand.u32 2147483647, %v457_v22 }
 0x79a   :  { %1214 = vpow2.f32 %v1131_v3 }
 0x79b   :  { %v471_v30 = vor.u32 1.1754944e-38, %v470_v27  ;;  %vm469_vm3 = vcmp.eq.f32.partialorder %v468_v28, 8.507059e+37 }
 0x79f   :  { %v1213_v23 = vpop.eup %1212 }
 0x7a0   :  { %v460_v5 = vmul.f32 %v1213_v23, %v457_v22  ;;  %v1215_v24 = vpop.eup %1214  ;;  %vm465_vm15 = vweird.f32 %v1213_v23 }
 0x7a1   :  { %v458_v25 = vadd.f32 1.0, %v1215_v24  ;;  %vm466_vm2 = vmor %vm464_vm0, %vm465_vm15 }
 0x7a2   :  { %v461_v4 = vsub.f32 1.0, %v460_v5 }
 0x7a3   :  { %1216 = vrcp.f32 %v458_v25  ;;  %v485_v39 = vand.u32 2147483648, %v458_v25  ;;  %vm479_vm5 = vweird.f32 %v458_v25  ;;  %v483_v40 = vand.u32 2147483647, %v458_v25 }
 0x7a4   :  { %v462_v6 = vmul.f32 %v1213_v23, %v461_v4 }
 0x7a5   :  { %v486_v42 = vor.u32 1.1754944e-38, %v485_v39  ;;  %vm484_vm7 = vcmp.eq.f32.partialorder %v483_v40, 8.507059e+37 }
 0x7a6   :  { %v463_v26 = vadd.f32 %v1213_v23, %v462_v6 }
 0x7a8   :  { %v467_v29 = vsel %vm466_vm2, %v1213_v23, %v463_v26 }
 0x7a9   :  { %v472_v32 = vsel %vm469_vm3, %v471_v30, %v467_v29  ;;  %v1217_v34 = vpop.eup %1216  ;;  %vm1008_vm3 = vcmask 1043456  }
 0x7aa   :  { %v475_v35 = vmul.f32 %v1217_v34, %v458_v25  ;;  %vm480_vm4 = vweird.f32 %v1217_v34  ;;  %v497_v50 = vmul.f32 %v493_v47, %v472_v32 }
 0x7ab   :  { %vm481_vm6 = vmor %vm479_vm5, %vm480_vm4 }
 0x7ac   :  { %v476_v36 = vsub.f32 1.0, %v475_v35 }
 0x7ae   :  { %v477_v37 = vmul.f32 %v1217_v34, %v476_v36 }
 0x7b0   :  { %v478_v38 = vadd.f32 %v1217_v34, %v477_v37 }
 0x7b2   :  { %v482_v41 = vsel %vm481_vm6, %v1217_v34, %v478_v38 }
 0x7b3   :  { %v487_v44 = vsel %vm484_vm7, %v486_v42, %v482_v41 }
 0x7b4   :  { %v498_v53 = vmul.f32 %v494_v48, %v487_v44 }
 0x7ef   :  { %v502_v31 = vpop.permute.xlu2 %501 }
 0x7f0   :  { %v507_v33 = vmul.f32 %v502_v31, %v472_v32 }
 0x7f2   :  { %511 = vrot.lane.b32.xlu1 %v507_v33, %s1419_s0 }
 0x808   :  { %v504_v43 = vpop.permute.xlu0 %503 }
 0x809   :  { %v508_v45 = vmul.f32 %v504_v43, %v487_v44 }
 0x80b   :  { %513 = vrot.lane.b32.xlu2 %v508_v45, %s1419_s0 }
 0x864   :  { %v512_v54 = vpop.permute.xlu1 %511 }
 0x865   :  { %v514_v56 = vpop.permute.xlu2 %513  ;;  %v1571_v51 = vadd.f32 %v512_v54, %v497_v50 }
 0x866   :  { %v1573_v52 = vadd.f32 %v514_v56, %v498_v53 }
 0x867   :  { %1218 = vtanh.f32 %v1571_v51  ;;  %v612_v53 = vrot.slane %v1571_v51, 7 }
 0x868   :  { %1220 = vtanh.f32 %v1573_v52 }
 0x86d   :  { %v1219_v60 = vpop.eup %1218 }
 0x86e   :  { %v1221_v61 = vpop.eup %1220  ;;  %523 = vrot.lane.b32.xlu0 %v1219_v60, %s1419_s0 }
 0x86f   :  { %525 = vrot.lane.b32.xlu1 %v1221_v61, %s1419_s0 }
 0x8e0   :  { %v524_v49 = vpop.permute.xlu0 %523 }
 0x8e1   :  { %v526_v58 = vpop.permute.xlu1 %525  ;;  %v529_v62 = vmul.f32 %v524_v49, %v472_v32  ;;  %v613_v49 = vrot.slane %v1573_v52, 7 }
 0x8e2   :  { %v530_v0 = vmul.f32 %v526_v58, %v487_v44 }
 0x8e3   :  { %v531_v46 = vpack.c.bf16 %v529_v62, %v529_v62  ;;  %v1580_v1 = vsel %vm1005_vm8, %v1554_v2, %v529_v62  ;;  %v1590_v2 = vld [vmem:[#allocation4 + $0x4] sm:$0x4] }
 0x8e4   :  { %v532_v9 = vpack.c.bf16 %v530_v0, %v530_v0  ;;  %v1583_v12 = vsel %vm1005_vm8, %v1556_v10, %v530_v0  ;;  %v562_v10 = vunpack.c.l.bf16 %v1590_v2 }
 0x8e5   :  { %v535_v14 = vunpack.c.l.b16 %v531_v46 }
 0x8e6   :  { %v536_v15 = vunpack.c.l.b16 %v532_v9 }
 0x8e7   :  { %v537_v16 = vrot.slane %v535_v14, 3 }
 0x8e8   :  { %v538_v17 = vrot.slane %v536_v15, 2 }
 0x8ea   :  { %v539_v18 = vsel %vm191_vm10, %v538_v17, %v537_v16 }
 0x8eb   :  { %v540_v63 = vpack.c.b16 %v539_v18, %v539_v18 }
 0x8ed   :  { %541 = vrot.lane.b32.xlu2 %v540_v63, %s1415_s23 }
 0x947   :  { %v542_v57 = vpop.permute.xlu2 %541 }
 0x948   :  { %1132 = vmatmul.msk.bf16.vlgmr.msrb.gmra.mxu0 %vm75_vm1, %v542_v57 }
 0x9c5   :  { %v555_v19 = vpop.f32.mrf.mxu0 }
 0x9c6   :  { %v564_v20 = vrot.slane %v555_v19, 4  ;;  %v565_v7 = vrot.slane %v555_v19, 5 }
 0x9c8   :  { %v568_v8 = vadd.f32 %v564_v20, %v561_v55  ;;  %v569_v11 = vadd.f32 %v565_v7, %v562_v10 }
 0x9ca   :  { %1222 = vtanh.f32 %v568_v8  ;;  %v1133_v23 = vmul.f32 -1.442695, %v568_v8  ;;  %v1134_v3 = vmul.f32 -1.442695, %v569_v11 }
 0x9cb   :  { %1224 = vtanh.f32 %v569_v11 }
 0x9cc   :  { %1226 = vpow2.f32 %v1133_v23 }
 0x9cd   :  { %v557_v13 = vpop.f32.mrf.mxu0  ;;  %1228 = vpow2.f32 %v1134_v3 }
 0x9d0   :  { %v1223_v21 = vpop.eup %1222 }
 0x9d1   :  { %v1225_v22 = vpop.eup %1224  ;;  %620 = vrot.lane.b32.xlu0 %v1223_v21, %s1419_s0 }
 0x9d2   :  { %622 = vrot.lane.b32.xlu1 %v1225_v22, %s1419_s0  ;;  %v1227_v5 = vpop.eup %1226 }
 0x9d3   :  { %v1229_v4 = vpop.eup %1228  ;;  %v576_v6 = vadd.f32 1.0, %v1227_v5 }
 0x9d4   :  { %v577_v24 = vadd.f32 1.0, %v1229_v4 }
 0x9d5   :  { %1230 = vrcp.f32 %v576_v6  ;;  %v589_v35 = vand.u32 2147483648, %v576_v6  ;;  %vm583_vm12 = vweird.f32 %v576_v6  ;;  %v587_v37 = vand.u32 2147483647, %v576_v6 }
 0x9d6   :  { %1232 = vrcp.f32 %v577_v24  ;;  %v604_v36 = vand.u32 2147483648, %v577_v24  ;;  %vm598_vm13 = vweird.f32 %v577_v24  ;;  %v602_v38 = vand.u32 2147483647, %v577_v24 }
 0x9d7   :  { %v590_v41 = vor.u32 1.1754944e-38, %v589_v35  ;;  %vm588_vm0 = vcmp.eq.f32.partialorder %v587_v37, 8.507059e+37 }
 0x9d8   :  { %v605_v42 = vor.u32 1.1754944e-38, %v604_v36  ;;  %vm603_vm2 = vcmp.eq.f32.partialorder %v602_v38, 8.507059e+37 }
 0x9db   :  { %v1231_v25 = vpop.eup %1230 }
 0x9dc   :  { %v1233_v26 = vpop.eup %1232  ;;  %v579_v27 = vmul.f32 %v1231_v25, %v576_v6  ;;  %vm584_vm9 = vweird.f32 %v1231_v25 }
 0x9dd   :  { %v594_v28 = vmul.f32 %v1233_v26, %v577_v24  ;;  %vm599_vm11 = vweird.f32 %v1233_v26  ;;  %vm585_vm14 = vmor %vm583_vm12, %vm584_vm9 }
 0x9de   :  { %v580_v29 = vsub.f32 1.0, %v579_v27  ;;  %vm600_vm15 = vmor %vm598_vm13, %vm599_vm11  ;;  %vm1011_vm13 = vcmask 1044480  }
 0x9df   :  { %v595_v30 = vsub.f32 1.0, %v594_v28 }
 0x9e0   :  { %v581_v31 = vmul.f32 %v1231_v25, %v580_v29 }
 0x9e1   :  { %v596_v32 = vmul.f32 %v1233_v26, %v595_v30 }
 0x9e2   :  { %v582_v33 = vadd.f32 %v1231_v25, %v581_v31 }
 0x9e3   :  { %v597_v34 = vadd.f32 %v1233_v26, %v596_v32 }
 0x9e4   :  { %v586_v39 = vsel %vm585_vm14, %v1231_v25, %v582_v33 }
 0x9e5   :  { %v601_v40 = vsel %vm600_vm15, %v1233_v26, %v597_v34  ;;  %v591_v44 = vsel %vm588_vm0, %v590_v41, %v586_v39 }
 0x9e6   :  { %v606_v47 = vsel %vm603_vm2, %v605_v42, %v601_v40  ;;  %v616_v54 = vmul.f32 %v612_v53, %v591_v44 }
 0x9e7   :  { %v617_v58 = vmul.f32 %v613_v49, %v606_v47 }
 0xa43   :  { %v621_v43 = vpop.permute.xlu0 %620 }
 0xa44   :  { %v623_v45 = vpop.permute.xlu1 %622  ;;  %v626_v48 = vmul.f32 %v621_v43, %v591_v44 }
 0xa45   :  { %v627_v50 = vmul.f32 %v623_v45, %v606_v47 }
 0xa46   :  { %630 = vrot.lane.b32.xlu2 %v626_v48, %s1419_s0 }
 0xa47   :  { %632 = vrot.lane.b32.xlu0 %v627_v50, %s1419_s0 }
 0xaa0   :  { %v631_v56 = vpop.permute.xlu2 %630 }
 0xaa1   :  { %v1603_v60 = vadd.f32 %v631_v56, %v616_v54 }
 0xaa3   :  { %1234 = vtanh.f32 %v1603_v60  ;;  %v727_v49 = vrot.slane %v1603_v60, 7 }
 0xaa9   :  { %v1235_v61 = vpop.eup %1234 }
 0xaaa   :  { %642 = vrot.lane.b32.xlu1 %v1235_v61, %s1419_s0 }
 0xab9   :  { %v633_v62 = vpop.permute.xlu0 %632 }
 0xaba   :  { %v1608_v0 = vadd.f32 %v633_v62, %v617_v58 }
 0xabc   :  { %1236 = vtanh.f32 %v1608_v0  ;;  %v728_v50 = vrot.slane %v1608_v0, 7 }
 0xac2   :  { %v1237_v46 = vpop.eup %1236 }
 0xac3   :  { %644 = vrot.lane.b32.xlu2 %v1237_v46, %s1419_s0 }
 0xb1c   :  { %v643_v51 = vpop.permute.xlu1 %642 }
 0xb1d   :  { %v645_v9 = vpop.permute.xlu2 %644  ;;  %v648_v14 = vmul.f32 %v643_v51, %v591_v44 }
 0xb1e   :  { %v649_v15 = vmul.f32 %v645_v9, %v606_v47 }
 0xb1f   :  { %v650_v16 = vpack.c.bf16 %v648_v14, %v648_v14  ;;  %v1613_v17 = vsel %vm1008_vm3, %v1580_v1, %v648_v14 }
 0xb20   :  { %v651_v18 = vpack.c.bf16 %v649_v15, %v649_v15  ;;  %v1616_v52 = vsel %vm1008_vm3, %v1583_v12, %v649_v15 }
 0xb21   :  { %v654_v63 = vunpack.c.l.b16 %v650_v16 }
 0xb22   :  { %v655_v57 = vunpack.c.l.b16 %v651_v18 }
 0xb23   :  { %v656_v19 = vrot.slane %v654_v63, 4 }
 0xb24   :  { %v657_v20 = vrot.slane %v655_v57, 3 }
 0xb26   :  { %v658_v7 = vsel %vm191_vm10, %v657_v20, %v656_v19 }
 0xb27   :  { %v659_v8 = vpack.c.b16 %v658_v7, %v658_v7 }
 0xb29   :  { %660 = vrot.lane.b32.xlu0 %v659_v8, %s1415_s23 }
 0xb9b   :  { %v661_v11 = vpop.permute.xlu0 %660 }
 0xb9c   :  { %1135 = vmatmul.msk.bf16.vlgmr.msrb.gmra.mxu1 %vm75_vm1, %v661_v11 }
 0xc19   :  { %v674_v13 = vpop.f32.mrf.mxu1 }
 0xc1a   :  { %v679_v21 = vrot.slane %v674_v13, 3  ;;  %v680_v1 = vrot.slane %v674_v13, 4 }
 0xc1c   :  { %v683_v22 = vadd.f32 %v679_v21, %v561_v55  ;;  %v684_v12 = vadd.f32 %v680_v1, %v562_v10  ;;  %v1648_v21 = vld [vmem:[#allocation4] sm:$0x8] }
 0xc1d   :  { %v795_v1 = vunpack.c.l.bf16 %v1648_v21 }
 0xc1e   :  { %1238 = vtanh.f32 %v683_v22  ;;  %v1137_v4 = vmul.f32 -1.442695, %v684_v12  ;;  %v1136_v59 = vmul.f32 -1.442695, %v683_v22 }
 0xc1f   :  { %1240 = vtanh.f32 %v684_v12 }
 0xc20   :  { %1242 = vpow2.f32 %v1137_v4 }
 0xc21   :  { %v676_v23 = vpop.f32.mrf.mxu1 }
 0xc24   :  { %v1239_v3 = vpop.eup %1238 }
 0xc25   :  { %v1241_v5 = vpop.eup %1240  ;;  %735 = vrot.lane.b32.xlu1 %v1239_v3, %s1419_s0 }
 0xc26   :  { %737 = vrot.lane.b32.xlu2 %v1241_v5, %s1419_s0  ;;  %v1243_v6 = vpop.eup %1242 }
 0xc27   :  { %v692_v24 = vadd.f32 1.0, %v1243_v6 }
 0xc29   :  { %1244 = vrcp.f32 %v692_v24  ;;  %v719_v29 = vand.u32 2147483648, %v692_v24  ;;  %vm713_vm5 = vweird.f32 %v692_v24  ;;  %v717_v30 = vand.u32 2147483647, %v692_v24 }
 0xc2a   :  { %1246 = vpow2.f32 %v1136_v59 }
 0xc2b   :  { %v720_v32 = vor.u32 1.1754944e-38, %v719_v29  ;;  %vm718_vm7 = vcmp.eq.f32.partialorder %v717_v30, 8.507059e+37 }
 0xc2f   :  { %v1245_v25 = vpop.eup %1244 }
 0xc30   :  { %v709_v55 = vmul.f32 %v1245_v25, %v692_v24  ;;  %v1247_v10 = vpop.eup %1246  ;;  %vm714_vm4 = vweird.f32 %v1245_v25 }
 0xc31   :  { %v691_v27 = vadd.f32 1.0, %v1247_v10  ;;  %vm715_vm6 = vmor %vm713_vm5, %vm714_vm4 }
 0xc32   :  { %v710_v2 = vsub.f32 1.0, %v709_v55 }
 0xc33   :  { %1248 = vrcp.f32 %v691_v27  ;;  %v704_v41 = vand.u32 2147483648, %v691_v27  ;;  %vm698_vm9 = vweird.f32 %v691_v27  ;;  %v702_v42 = vand.u32 2147483647, %v691_v27 }
 0xc34   :  { %v711_v26 = vmul.f32 %v1245_v25, %v710_v2 }
 0xc35   :  { %v705_v44 = vor.u32 1.1754944e-38, %v704_v41  ;;  %vm703_vm12 = vcmp.eq.f32.partialorder %v702_v42, 8.507059e+37 }
 0xc36   :  { %v712_v28 = vadd.f32 %v1245_v25, %v711_v26 }
 0xc38   :  { %v716_v31 = vsel %vm715_vm6, %v1245_v25, %v712_v28 }
 0xc39   :  { %v721_v34 = vsel %vm718_vm7, %v720_v32, %v716_v31  ;;  %v1249_v35 = vpop.eup %1248  ;;  %vm1014_vm7 = vcmask 1045504  }
 0xc3a   :  { %v694_v37 = vmul.f32 %v1249_v35, %v691_v27  ;;  %vm699_vm8 = vweird.f32 %v1249_v35  ;;  %v732_v53 = vmul.f32 %v728_v50, %v721_v34 }
 0xc3b   :  { %vm700_vm11 = vmor %vm698_vm9, %vm699_vm8 }
 0xc3c   :  { %v695_v38 = vsub.f32 1.0, %v694_v37 }
 0xc3e   :  { %v696_v39 = vmul.f32 %v1249_v35, %v695_v38 }
 0xc40   :  { %v697_v40 = vadd.f32 %v1249_v35, %v696_v39 }
 0xc42   :  { %v701_v43 = vsel %vm700_vm11, %v1249_v35, %v697_v40 }
 0xc43   :  { %v706_v47 = vsel %vm703_vm12, %v705_v44, %v701_v43 }
 0xc44   :  { %v731_v58 = vmul.f32 %v727_v49, %v706_v47 }
 0xc80   :  { %v738_v33 = vpop.permute.xlu2 %737 }
 0xc81   :  { %v742_v36 = vmul.f32 %v738_v33, %v721_v34 }
 0xc83   :  { %747 = vrot.lane.b32.xlu1 %v742_v36, %s1419_s0 }
 0xc97   :  { %v736_v45 = vpop.permute.xlu1 %735 }
 0xc98   :  { %v741_v48 = vmul.f32 %v736_v45, %v706_v47 }
 0xc9a   :  { %745 = vrot.lane.b32.xlu0 %v741_v48, %s1419_s0 }
 0xcf5   :  { %v748_v54 = vpop.permute.xlu1 %747 }
 0xcf6   :  { %v1630_v56 = vadd.f32 %v748_v54, %v732_v53 }
 0xcf8   :  { %1250 = vtanh.f32 %v1630_v56  ;;  %v847_v49 = vrot.slane %v1630_v56, 7 }
 0xcfe   :  { %v1251_v61 = vpop.eup %1250 }
 0xcff   :  { %759 = vrot.lane.b32.xlu0 %v1251_v61, %s1419_s0 }
 0xd0c   :  { %v746_v62 = vpop.permute.xlu0 %745 }
 0xd0d   :  { %v1635_v46 = vadd.f32 %v746_v62, %v731_v58 }
 0xd0f   :  { %1252 = vtanh.f32 %v1635_v46  ;;  %v846_v61 = vrot.slane %v1635_v46, 7 }
 0xd15   :  { %v1253_v51 = vpop.eup %1252 }
 0xd16   :  { %757 = vrot.lane.b32.xlu2 %v1253_v51, %s1419_s0 }
 0xd70   :  { %v758_v0 = vpop.permute.xlu2 %757 }
 0xd71   :  { %v760_v9 = vpop.permute.xlu0 %759  ;;  %v763_v14 = vmul.f32 %v758_v0, %v706_v47 }
 0xd72   :  { %v764_v15 = vmul.f32 %v760_v9, %v721_v34 }
 0xd73   :  { %v765_v16 = vpack.c.bf16 %v763_v14, %v763_v14  ;;  %v1640_v18 = vsel %vm1011_vm13, %v1613_v17, %v763_v14  ;;  %v1650_v17 = vld [vmem:[#allocation4 + $0x4] sm:$0x8] }
 0xd74   :  { %v766_v63 = vpack.c.bf16 %v764_v15, %v764_v15  ;;  %v1643_v60 = vsel %vm1011_vm13, %v1616_v52, %v764_v15  ;;  %v796_v52 = vunpack.c.l.bf16 %v1650_v17 }
 0xd75   :  { %v769_v57 = vunpack.c.l.b16 %v765_v16 }
 0xd76   :  { %v770_v19 = vunpack.c.l.b16 %v766_v63 }
 0xd77   :  { %v771_v20 = vrot.slane %v769_v57, 5 }
 0xd78   :  { %v772_v7 = vrot.slane %v770_v19, 4 }
 0xd7a   :  { %v773_v8 = vsel %vm191_vm10, %v772_v7, %v771_v20 }
 0xd7b   :  { %v774_v11 = vpack.c.b16 %v773_v8, %v773_v8 }
 0xd7d   :  { %775 = vrot.lane.b32.xlu1 %v774_v11, %s1415_s23 }
 0xdef   :  { %v776_v13 = vpop.permute.xlu1 %775 }
 0xdf0   :  { %1138 = vmatmul.msk.bf16.vlgmr.msrb.gmra.mxu2 %vm75_vm1, %v776_v13 }
 0xe73   :  { %v789_v22 = vpop.f32.mrf.mxu2 }
 0xe74   :  { %v798_v12 = vrot.slane %v789_v22, 2  ;;  %v799_v23 = vrot.slane %v789_v22, 3 }
 0xe76   :  { %v802_v3 = vadd.f32 %v798_v12, %v795_v1  ;;  %v803_v5 = vadd.f32 %v799_v23, %v796_v52 }
 0xe78   :  { %1254 = vtanh.f32 %v802_v3  ;;  %v1139_v25 = vmul.f32 -1.442695, %v802_v3  ;;  %v1140_v10 = vmul.f32 -1.442695, %v803_v5 }
 0xe79   :  { %1256 = vtanh.f32 %v803_v5 }
 0xe7a   :  { %1258 = vpow2.f32 %v1139_v25 }
 0xe7b   :  { %v791_v4 = vpop.f32.mrf.mxu2 }
 0xe7e   :  { %v1255_v6 = vpop.eup %1254 }
 0xe7f   :  { %v1257_v24 = vpop.eup %1256  ;;  %854 = vrot.lane.b32.xlu2 %v1255_v6, %s1419_s0 }
 0xe80   :  { %856 = vrot.lane.b32.xlu0 %v1257_v24, %s1419_s0  ;;  %v1259_v59 = vpop.eup %1258 }
 0xe81   :  { %v810_v55 = vadd.f32 1.0, %v1259_v59 }
 0xe83   :  { %1260 = vrcp.f32 %v810_v55  ;;  %v823_v32 = vand.u32 2147483648, %v810_v55  ;;  %vm817_vm15 = vweird.f32 %v810_v55  ;;  %v821_v33 = vand.u32 2147483647, %v810_v55 }
 0xe84   :  { %1262 = vpow2.f32 %v1140_v10 }
 0xe85   :  { %v824_v35 = vor.u32 1.1754944e-38, %v823_v32  ;;  %vm822_vm2 = vcmp.eq.f32.partialorder %v821_v33, 8.507059e+37 }
 0xe89   :  { %v1261_v2 = vpop.eup %1260 }
 0xe8a   :  { %v813_v26 = vmul.f32 %v1261_v2, %v810_v55  ;;  %v1263_v29 = vpop.eup %1262  ;;  %vm818_vm14 = vweird.f32 %v1261_v2 }
 0xe8b   :  { %v811_v30 = vadd.f32 1.0, %v1263_v29  ;;  %vm819_vm0 = vmor %vm817_vm15, %vm818_vm14 }
 0xe8c   :  { %v814_v27 = vsub.f32 1.0, %v813_v26 }
 0xe8d   :  { %1264 = vrcp.f32 %v811_v30  ;;  %v838_v44 = vand.u32 2147483648, %v811_v30  ;;  %vm832_vm4 = vweird.f32 %v811_v30  ;;  %v836_v45 = vand.u32 2147483647, %v811_v30 }
 0xe8e   :  { %v815_v28 = vmul.f32 %v1261_v2, %v814_v27 }
 0xe8f   :  { %v839_v48 = vor.u32 1.1754944e-38, %v838_v44  ;;  %vm837_vm6 = vcmp.eq.f32.partialorder %v836_v45, 8.507059e+37 }
 0xe90   :  { %v816_v31 = vadd.f32 %v1261_v2, %v815_v28 }
 0xe92   :  { %v820_v34 = vsel %vm819_vm0, %v1261_v2, %v816_v31  ;;  %vm1017_vm0 = vcmask 1046528  }
 0xe93   :  { %v825_v37 = vsel %vm822_vm2, %v824_v35, %v820_v34  ;;  %v1265_v39 = vpop.eup %1264  ;;  %vm1041_vm2 = vcmask 253952  }
 0xe94   :  { %v828_v40 = vmul.f32 %v1265_v39, %v811_v30  ;;  %vm833_vm3 = vweird.f32 %v1265_v39  ;;  %v850_v58 = vmul.f32 %v846_v61, %v825_v37 }
 0xe95   :  { %vm834_vm5 = vmor %vm832_vm4, %vm833_vm3  ;;  %vm1039_vm3 = vcmask 261127  }
 0xe96   :  { %v829_v41 = vsub.f32 1.0, %v828_v40 }
 0xe98   :  { %v830_v42 = vmul.f32 %v1265_v39, %v829_v41 }
 0xe9a   :  { %v831_v43 = vadd.f32 %v1265_v39, %v830_v42 }
 0xe9c   :  { %v835_v47 = vsel %vm834_vm5, %v1265_v39, %v831_v43 }
 0xe9d   :  { %v840_v53 = vsel %vm837_vm6, %v839_v48, %v835_v47 }
 0xe9e   :  { %v851_v62 = vmul.f32 %v847_v49, %v840_v53 }
 0xed9   :  { %v855_v36 = vpop.permute.xlu2 %854 }
 0xeda   :  { %v860_v38 = vmul.f32 %v855_v36, %v825_v37 }
 0xedc   :  { %864 = vrot.lane.b32.xlu1 %v860_v38, %s1419_s0 }
 0xef2   :  { %v857_v50 = vpop.permute.xlu0 %856 }
 0xef3   :  { %v861_v54 = vmul.f32 %v857_v50, %v840_v53 }
 0xef5   :  { %866 = vrot.lane.b32.xlu2 %v861_v54, %s1419_s0 }
 0xf4e   :  { %v865_v51 = vpop.permute.xlu1 %864 }
 0xf4f   :  { %v867_v0 = vpop.permute.xlu2 %866  ;;  %v1664_v9 = vadd.f32 %v865_v51, %v850_v58 }
 0xf50   :  { %v1666_v14 = vadd.f32 %v867_v0, %v851_v62 }
 0xf51   :  { %1266 = vtanh.f32 %v1664_v9  ;;  %v961_v51 = vrot.slane %v1664_v9, 7 }
 0xf52   :  { %1268 = vtanh.f32 %v1666_v14  ;;  %v962_v54 = vrot.slane %v1666_v14, 7 }
 0xf57   :  { %v1267_v15 = vpop.eup %1266 }
 0xf58   :  { %v1269_v16 = vpop.eup %1268  ;;  %876 = vrot.lane.b32.xlu0 %v1267_v15, %s1419_s0 }
 0xf59   :  { %878 = vrot.lane.b32.xlu1 %v1269_v16, %s1419_s0 }
 0xfca   :  { %v877_v46 = vpop.permute.xlu0 %876 }
 0xfcb   :  { %v879_v56 = vpop.permute.xlu1 %878  ;;  %v882_v63 = vmul.f32 %v877_v46, %v825_v37 }
 0xfcc   :  { %v883_v57 = vmul.f32 %v879_v56, %v840_v53 }
 0xfcd   :  { %v884_v19 = vpack.c.bf16 %v882_v63, %v882_v63  ;;  %v1673_v20 = vsel %vm1014_vm7, %v1640_v18, %v882_v63 }
 0xfce   :  { %v885_v7 = vpack.c.bf16 %v883_v57, %v883_v57  ;;  %v1676_v8 = vsel %vm1014_vm7, %v1643_v60, %v883_v57 }
 0xfcf   :  { %v888_v11 = vunpack.c.l.b16 %v884_v19 }
 0xfd0   :  { %v889_v13 = vunpack.c.l.b16 %v885_v7 }
 0xfd1   :  { %v890_v22 = vrot.slane %v888_v11, 6 }
 0xfd2   :  { %v891_v12 = vrot.slane %v889_v13, 5 }
 0xfd4   :  { %v892_v23 = vsel %vm191_vm10, %v891_v12, %v890_v22 }
 0xfd5   :  { %v893_v3 = vpack.c.b16 %v892_v23, %v892_v23 }
 0xfd7   :  { %894 = vrot.lane.b32.xlu2 %v893_v3, %s1415_s23 }
0x1031   :  { %v895_v5 = vpop.permute.xlu2 %894 }
0x1032   :  { %1141 = vmatmul.msk.bf16.vlgmr.msrb.gmra.mxu3 %vm75_vm1, %v895_v5 }
0x10b5   :  { %v908_v4 = vpop.f32.mrf.mxu3 }
0x10b6   :  { %v913_v6 = vrot.slane %v908_v4, 1  ;;  %v914_v18 = vrot.slane %v908_v4, 2 }
0x10b8   :  { %v917_v24 = vadd.f32 %v913_v6, %v795_v1  ;;  %v918_v60 = vadd.f32 %v914_v18, %v796_v52 }
0x10ba   :  { %1270 = vtanh.f32 %v917_v24  ;;  %v1142_v2 = vmul.f32 -1.442695, %v917_v24  ;;  %v1143_v10 = vmul.f32 -1.442695, %v918_v60 }
0x10bb   :  { %1272 = vtanh.f32 %v918_v60 }
0x10bc   :  { %1274 = vpow2.f32 %v1142_v2 }
0x10bd   :  { %v910_v25 = vpop.f32.mrf.mxu3  ;;  %1276 = vpow2.f32 %v1143_v10 }
0x10c0   :  { %v1271_v59 = vpop.eup %1270 }
0x10c1   :  { %v1273_v55 = vpop.eup %1272  ;;  %969 = vrot.lane.b32.xlu1 %v1271_v59, %s1419_s0 }
0x10c2   :  { %971 = vrot.lane.b32.xlu0 %v1273_v55, %s1419_s0  ;;  %v1275_v26 = vpop.eup %1274 }
0x10c3   :  { %v1277_v27 = vpop.eup %1276  ;;  %v925_v21 = vadd.f32 1.0, %v1275_v26 }
0x10c4   :  { %v926_v1 = vadd.f32 1.0, %v1277_v27 }
0x10c5   :  { %1278 = vrcp.f32 %v925_v21  ;;  %v938_v36 = vand.u32 2147483648, %v925_v21  ;;  %vm932_vm9 = vweird.f32 %v925_v21  ;;  %v936_v38 = vand.u32 2147483647, %v925_v21 }
0x10c6   :  { %1280 = vrcp.f32 %v926_v1  ;;  %v953_v37 = vand.u32 2147483648, %v926_v1  ;;  %vm947_vm11 = vweird.f32 %v926_v1  ;;  %v951_v39 = vand.u32 2147483647, %v926_v1 }
0x10c7   :  { %v939_v42 = vor.u32 1.1754944e-38, %v938_v36  ;;  %vm937_vm14 = vcmp.eq.f32.partialorder %v936_v38, 8.507059e+37 }
0x10c8   :  { %v954_v43 = vor.u32 1.1754944e-38, %v953_v37  ;;  %vm952_vm15 = vcmp.eq.f32.partialorder %v951_v39, 8.507059e+37 }
0x10cb   :  { %v1279_v17 = vpop.eup %1278 }
0x10cc   :  { %v1281_v52 = vpop.eup %1280  ;;  %v928_v28 = vmul.f32 %v1279_v17, %v925_v21  ;;  %vm933_vm10 = vweird.f32 %v1279_v17 }
0x10cd   :  { %v943_v29 = vmul.f32 %v1281_v52, %v926_v1  ;;  %vm948_vm8 = vweird.f32 %v1281_v52  ;;  %vm934_vm12 = vmor %vm932_vm9, %vm933_vm10 }
0x10ce   :  { %v929_v30 = vsub.f32 1.0, %v928_v28  ;;  %vm949_vm13 = vmor %vm947_vm11, %vm948_vm8 }
0x10cf   :  { %v944_v31 = vsub.f32 1.0, %v943_v29 }
0x10d0   :  { %v930_v32 = vmul.f32 %v1279_v17, %v929_v30 }
0x10d1   :  { %v945_v33 = vmul.f32 %v1281_v52, %v944_v31 }
0x10d2   :  { %v931_v34 = vadd.f32 %v1279_v17, %v930_v32 }
0x10d3   :  { %v946_v35 = vadd.f32 %v1281_v52, %v945_v33 }
0x10d4   :  { %v935_v40 = vsel %vm934_vm12, %v1279_v17, %v931_v34 }
0x10d5   :  { %v950_v41 = vsel %vm949_vm13, %v1281_v52, %v946_v35  ;;  %v940_v45 = vsel %vm937_vm14, %v939_v42, %v935_v40 }
0x10d6   :  { %v955_v48 = vsel %vm952_vm15, %v954_v43, %v950_v41  ;;  %v965_v0 = vmul.f32 %v961_v51, %v940_v45 }
0x10d7   :  { %v966_v61 = vmul.f32 %v962_v54, %v955_v48 }
0x1133   :  { %v970_v44 = vpop.permute.xlu1 %969 }
0x1134   :  { %v972_v47 = vpop.permute.xlu0 %971  ;;  %v975_v50 = vmul.f32 %v970_v44, %v940_v45 }
0x1135   :  { %v976_v53 = vmul.f32 %v972_v47, %v955_v48 }
0x1136   :  { %979 = vrot.lane.b32.xlu0 %v975_v50, %s1419_s0 }
0x1137   :  { %981 = vrot.lane.b32.xlu2 %v976_v53, %s1419_s0 }
0x1191   :  { %v982_v49 = vpop.permute.xlu2 %981 }
0x1192   :  { %v986_v58 = vadd.f32 %v982_v49, %v966_v61 }
0x1194   :  { %1282 = vtanh.f32 %v986_v58  ;;  %v1045_v9 = vrot.slane %v986_v58, 7 }
0x119a   :  { %v1283_v62 = vpop.eup %1282 }
0x119b   :  { %993 = vrot.lane.b32.xlu1 %v1283_v62, %s1419_s0 }
0x11a8   :  { %v980_v15 = vpop.permute.xlu0 %979 }
0x11a9   :  { %v985_v16 = vadd.f32 %v980_v15, %v965_v0 }
0x11ab   :  { %1284 = vtanh.f32 %v985_v16 }
0x11b1   :  { %v1285_v46 = vpop.eup %1284 }
0x11b2   :  { %991 = vrot.lane.b32.xlu2 %v1285_v46, %s1419_s0 }
0x120c   :  { %v992_v56 = vpop.permute.xlu2 %991 }
0x120d   :  { %v994_v63 = vpop.permute.xlu1 %993  ;;  %v997_v14 = vmul.f32 %v992_v56, %v940_v45 }
0x120e   :  { %v998_v57 = vmul.f32 %v994_v63, %v955_v48 }
0x120f   :  { %1033 = vrot.lane.b32.xlu0 %v997_v14, %s1415_s23  ;;  %v1018_v19 = vsel %vm1017_vm0, %v1673_v20, %v997_v14 }
0x1210   :  { %1022 = vrot.lane.b32.xlu2 %v1018_v19, %s1415_s23  ;;  %v1032_v7 = vrot.slane %v998_v57, 7  ;;  %v1019_v11 = vsel %vm1017_vm0, %v1676_v8, %v998_v57 }
0x1212   :  { %1035 = vrot.lane.b32.xlu1 %v1032_v7, %s1415_s23 }
0x1217   :  { %1024 = vrot.lane.b32.xlu0 %v1019_v11, %s1415_s23 }
0x1218   :  { %1048 = vrot.lane.b32.xlu2 %v1045_v9, %s1420_s1 }
0x121a   :  { %1046 = vrot.lane.b32.xlu1 %v985_v16, %s1420_s1 }
0x126a   :  { %v1023_v13 = vpop.permute.xlu2 %1022 }
0x126b   :  { %1028 = vst.msk [vmem:[#allocation9] sm:$0xff] %vm75_vm1, %v1023_v13 }
0x1272   :  { %v1049_v22 = vpop.permute.xlu2 %1048 }
0x1273   :  { %1053 = vst.msk [vmem:[#allocation3 + $0x1] sm:$0x1] %vm1041_vm2, %v1049_v22 }
0x1274   :  { %1060 = vst.msk [vmem:[#allocation12 + $0x1] sm:$0x1] %vm1041_vm2, %v1049_v22 }
0x1281   :  { %v1034_v20 = vpop.permute.xlu0 %1033 }
0x1282   :  { %1040 = vst.msk [vmem:[#allocation2 - $0x7] sm:$0x80] %vm1039_vm3, %v1034_v20 }
0x1283   :  { %1057 = vst.msk [vmem:[#allocation10 - $0x7] sm:$0x80] %vm1039_vm3, %v1034_v20 }
0x1284   :  { %v1036_v8 = vpop.permute.xlu1 %1035 }
0x1285   :  { %1042 = vst.msk [vmem:[#allocation2 + $0x1] sm:$0x1] %vm1041_vm2, %v1036_v8 }
0x1286   :  { %1058 = vst.msk [vmem:[#allocation10 + $0x1] sm:$0x1] %vm1041_vm2, %v1036_v8 }
0x1287   :  { %1084 = dma.vmem_to_hbm [thread:$0]  %s1080_s28, 32, %s1082_s5, [#allocation11]  }
0x1289   :  { %v1025_v12 = vpop.permute.xlu0 %1024 }
0x128a   :  { %1029 = vst.msk [vmem:[#allocation9 + $0x8] sm:$0xff] %vm75_vm1, %v1025_v12 }
0x128b   :  { %1073 = dma.vmem_to_hbm [thread:$0]  %s1066_s10, 256, %s1068_s8, [#allocation6], %s1424_s14, %s1424_s14, %s1425_s15  }
0x128c   :  { %v1047_v23 = vpop.permute.xlu1 %1046 }
0x128d   :  { %1052 = vst.msk [vmem:[#allocation3 - $0x7] sm:$0x80] %vm1039_vm3, %v1047_v23 }
0x128e   :  { %1059 = vst.msk [vmem:[#allocation12 - $0x7] sm:$0x80] %vm1039_vm3, %v1047_v23 }
0x128f   :  { %1095 = dma.vmem_to_hbm [thread:$0]  %s1091_s11, 32, %s1093_s2, [#allocation11]  }
0x1290   :  { %1410 = dma.done.wait [#allocation6], 256  }
0x1291   :  { %1411 = vsyncadd [#allocation6], 4294967040 }
0x1292   :  { %1412 = dma.done.wait [#allocation11], 64  }
0x1293   :  { %1413 = vsyncadd [#allocation11], 4294967232 }
0x1294   :  { %1108 = vsyncpa [#allocation5], 1 }
0x1295   :  { %1109 = vsyncpa [#allocation8], 1 }
0x1296   :  { %1110 = vsyncpa [#allocation6], 1 }
0x1297   :  { %1111 = vsyncpa [#allocation11], 1 }

</bundles_post_ra>
